<compile_context>
chip_gen: v5e
topology: v5e:2x2
jax: 0.10.0
libtpu: 0.0.40
codegen_flags: <defaults>
</compile_context>

<pallas_src>
import functools

import jax
import jax.numpy as jnp
from jax.experimental import pallas as pl
from jax.experimental.pallas import tpu as pltpu

BN_EPS = 1e-5
LEAKY_SLOPE = 0.2


# ----------------------------------------------------------------------------
# Fused Pallas kernel: 12 x (matmul -> [BatchNorm] -> activation), all in VMEM.
# ----------------------------------------------------------------------------
def _apply_act(y, act):
    if act == "leaky":
        return jnp.where(y >= 0.0, y, LEAKY_SLOPE * y)
    if act == "relu":
        return jnp.maximum(y, 0.0)
    if act == "sigmoid":
        t = jnp.exp(-jnp.abs(y))                       # EUP; never overflows
        inv = pl.reciprocal(1.0 + t, approx=False)
        return jnp.where(y >= 0.0, inv, t * inv)
    return y


def _ae_fused_kernel(*refs, layer_cfg, out_layers):
    """refs = [x, <per-layer consts...>, out, z, z_hat]  (all VMEM-resident).

    Per-layer consts: T (always); P, gamma_bcast, beta_bcast (only if BN).
    layer_cfg : static tuple of (use_bn, act) per layer.
    out_layers: static tuple of layer indices whose activations are outputs,
                in the same order as the output refs.
    """
    n_out = len(out_layers)
    in_refs, out_refs = refs[:-n_out], refs[-n_out:]

    y = in_refs[0][...].astype(jnp.float32)            # [R, C0*W0]
    idx = 1
    for li, (use_bn, act) in enumerate(layer_cfg):
        T = in_refs[idx][...]
        idx += 1
        # (de)convolution along W as one small MXU matmul on the flat layout.
        y = jnp.dot(y, T, preferred_element_type=jnp.float32)
        if use_bn:
            P = in_refs[idx][...]
            gamma = in_refs[idx + 1][...]
            beta = in_refs[idx + 2][...]
            idx += 3
            # Training-mode BatchNorm2d: per-channel stats over (B, H, W).
            # P pools the W positions of each channel (lane axis); rows are
            # the flattened batch axis (sublane reduction).
            ch_mean = jnp.mean(
                jnp.dot(y, P, preferred_element_type=jnp.float32),
                axis=0, keepdims=True)                           # [1, C*W]
            d = y - ch_mean
            ch_var = jnp.mean(
                jnp.dot(d * d, P, preferred_element_type=jnp.float32),
                axis=0, keepdims=True)                           # [1, C*W]
            y = d * jax.lax.rsqrt(ch_var + BN_EPS)
            y = y * gamma + beta
        y = _apply_act(y, act)
        if li in out_layers:
            o_ref = out_refs[out_layers.index(li)]
            o_ref[...] = y.astype(o_ref.dtype)


# ----------------------------------------------------------------------------
# Constant (trace-time) operand construction: conv -> banded matrix, BN consts.
# Flat layout convention: column index = c * W + w  (channel-major, W minor).
# ----------------------------------------------------------------------------
def _conv_matrix(w, w_in, stride=2, pad=1):
    """PyTorch Conv2d weight [Cout, Cin, 1, k] -> T [Cin*W_in, Cout*W_out]."""
    cout, cin, _, k = w.shape
    w_out = (w_in + 2 * pad - k) // stride + 1
    wi = jnp.arange(w_in)[:, None, None]
    wo = jnp.arange(w_out)[None, :, None]
    t = jnp.arange(k)[None, None, :]
    sel = (t == wi + pad - stride * wo).astype(jnp.float32)      # [W_in, W_out, k]
    t4 = jnp.einsum("oct,vwt->cvow", w[:, :, 0, :].astype(jnp.float32), sel,
                    precision=jax.lax.Precision.HIGHEST)         # [Cin,Win,Cout,Wout]
    return t4.reshape(cin * w_in, cout * w_out), cout, w_out


def _convT_matrix(w, w_in, stride=2, pad=1):
    """PyTorch ConvTranspose2d weight [Cin, Cout, 1, k] -> T [Cin*W_in, Cout*W_out]."""
    cin, cout, _, k = w.shape
    w_out = (w_in - 1) * stride - 2 * pad + k
    wi = jnp.arange(w_in)[:, None, None]
    wo = jnp.arange(w_out)[None, :, None]
    t = jnp.arange(k)[None, None, :]
    sel = (t == wo - stride * wi + pad).astype(jnp.float32)      # [W_in, W_out, k]
    t4 = jnp.einsum("cot,vwt->cvow", w[:, :, 0, :].astype(jnp.float32), sel,
                    precision=jax.lax.Precision.HIGHEST)
    return t4.reshape(cin * w_in, cout * w_out), cout, w_out


def _bn_consts(c, w, gamma, beta):
    """Per-channel W-pooling matrix + broadcast affine params for flat layout."""
    P = jnp.kron(jnp.eye(c, dtype=jnp.float32),
                 jnp.full((w, w), 1.0 / w, jnp.float32))         # [C*W, C*W]
    g = jnp.repeat(gamma.astype(jnp.float32), w).reshape(1, c * w)
    b = jnp.repeat(beta.astype(jnp.float32), w).reshape(1, c * w)
    return P, g, b


def _build_plan(params, w_in0):
    """Flattened per-layer constant operands + static layer config."""
    operands, cfg, shapes = [], [], []
    w_in = w_in0

    def add_layer(w, transpose, use_bn, act):
        nonlocal w_in
        if transpose:
            T, cout, w_out = _convT_matrix(w, w_in)
        else:
            T, cout, w_out = _conv_matrix(w, w_in)
        operands.append(T)
        if use_bn:
            P, g, b = _bn_consts(cout, w_out,
                                 params["bn_gamma"][cout], params["bn_beta"][cout])
            operands.extend([P, g, b])
        cfg.append((use_bn, act))
        shapes.append((cout, w_out))
        w_in = w_out

    enc = params["encoder"]
    add_layer(enc[0], False, False, "leaky")
    for w in enc[1:]:
        add_layer(w, False, True, "leaky")

    dec = params["decoder"]
    for w in dec[:3]:
        add_layer(w, True, True, "relu")
    add_layer(dec[3], True, False, "sigmoid")

    enc_ = params["encoder_"]
    add_layer(enc_[0], False, False, "leaky")
    for w in enc_[1:]:
        add_layer(w, False, True, "leaky")

    return operands, tuple(cfg), shapes


# ----------------------------------------------------------------------------
# Full module forward: one pallas_call for the whole network.
# ----------------------------------------------------------------------------
def autoencoder_conv_forward(x, params):
    B, C, H, W = x.shape
    R = B * H
    # NCHW -> flat channels-last-ish [B*H, C*W]  (single transpose on entry).
    x_flat = jnp.transpose(x, (0, 2, 1, 3)).reshape(R, C * W).astype(jnp.float32)

    operands, cfg, shapes = _build_plan(params, W)
    out_layers = (7, 3, 11)                     # output, z, z_hat
    out_shape = tuple(
        jax.ShapeDtypeStruct((R, shapes[li][0] * shapes[li][1]), jnp.float32)
        for li in out_layers)

    kernel = functools.partial(_ae_fused_kernel, layer_cfg=cfg,
                               out_layers=out_layers)
    vmem = pl.BlockSpec(memory_space=pltpu.MemorySpace.VMEM)

    out_flat, z_flat, zhat_flat = pl.pallas_call(
        kernel,
        out_shape=out_shape,
        in_specs=[vmem] * (1 + len(operands)),
        out_specs=(vmem, vmem, vmem),
    )(x_flat, *operands)

    def unflatten(flat, li):
        c, w = shapes[li]
        return flat.reshape(B, H, c, w).transpose(0, 2, 1, 3)    # back to NCHW

    return unflatten(out_flat, 7), unflatten(z_flat, 3), unflatten(zhat_flat, 11)


# ----------------------------------------------------------------------------
# Parameters (deterministic synthetic init, PyTorch layouts).
# ----------------------------------------------------------------------------
def _init_params(key, num_feature_map, num_hidden_map):
    F, Hm = num_feature_map, num_hidden_map
    enc_ch = [(3, F), (F, 2 * F), (2 * F, 4 * F), (4 * F, Hm)]
    dec_ch = [(Hm, 4 * F), (4 * F, 2 * F), (2 * F, F), (F, 3)]

    def conv_w(k, cin, cout):        # Conv2d weight [Cout, Cin, 1, 4]
        return 0.1 * jax.random.normal(k, (cout, cin, 1, 4), jnp.float32)

    def convT_w(k, cin, cout):       # ConvTranspose2d weight [Cin, Cout, 1, 4]
        return 0.1 * jax.random.normal(k, (cin, cout, 1, 4), jnp.float32)

    keys = jax.random.split(key, 16)
    params = {
        "encoder":  [conv_w(keys[i], ci, co) for i, (ci, co) in enumerate(enc_ch)],
        "decoder":  [convT_w(keys[4 + i], ci, co) for i, (ci, co) in enumerate(dec_ch)],
        "encoder_": [conv_w(keys[8 + i], ci, co) for i, (ci, co) in enumerate(enc_ch)],
    }
    # BatchNorm affine params: torch default gamma=1, beta=0.
    chans = {2 * F, 4 * F, Hm, F}
    params["bn_gamma"] = {c: jnp.ones((c,), jnp.float32) for c in chans}
    params["bn_beta"] = {c: jnp.zeros((c,), jnp.float32) for c in chans}
    return params


# ----------------------------------------------------------------------------
if __name__ == "__main__":
    NUM_FEATURE_MAP = 8
    NUM_HIDDEN_MAP = 16

    key = jax.random.PRNGKey(0)
    k_param, k_x = jax.random.split(key)
    params = _init_params(k_param, NUM_FEATURE_MAP, NUM_HIDDEN_MAP)

    # x: [B=2, C=3, H=4, W=16] (NCHW); W divisible by 16 (4 stride-2 convs).
    x = jax.random.uniform(k_x, (2, 3, 4, 16), jnp.float32)

    fwd = jax.jit(lambda xx: autoencoder_conv_forward(xx, params))
    output, z, z_hat = fwd(x)
    jax.block_until_ready((output, z, z_hat))

    assert output.shape == (2, 3, 4, 16), output.shape
    assert z.shape == (2, NUM_HIDDEN_MAP, 4, 1), z.shape
    assert z_hat.shape == (2, NUM_HIDDEN_MAP, 4, 1), z_hat.shape
    assert bool(jnp.all(jnp.isfinite(output)))
    assert bool(jnp.all(jnp.isfinite(z))) and bool(jnp.all(jnp.isfinite(z_hat)))
    assert bool(jnp.all((output >= 0.0) & (output <= 1.0)))     # sigmoid output

    print("KERNEL_OK")
</pallas_src>

<mosaic_0001>
module attributes {stable_mosaic.version = 11 : i64} {
  func.func @_ae_fused_kernel(%arg0: memref<8x48xf32, #tpu.memory_space<vmem>>, %arg1: memref<48x64xf32, #tpu.memory_space<vmem>>, %arg2: memref<64x64xf32, #tpu.memory_space<vmem>>, %arg3: memref<64x64xf32, #tpu.memory_space<vmem>>, %arg4: memref<1x64xf32, #tpu.memory_space<vmem>>, %arg5: memref<1x64xf32, #tpu.memory_space<vmem>>, %arg6: memref<64x64xf32, #tpu.memory_space<vmem>>, %arg7: memref<64x64xf32, #tpu.memory_space<vmem>>, %arg8: memref<1x64xf32, #tpu.memory_space<vmem>>, %arg9: memref<1x64xf32, #tpu.memory_space<vmem>>, %arg10: memref<64x16xf32, #tpu.memory_space<vmem>>, %arg11: memref<16x16xf32, #tpu.memory_space<vmem>>, %arg12: memref<1x16xf32, #tpu.memory_space<vmem>>, %arg13: memref<1x16xf32, #tpu.memory_space<vmem>>, %arg14: memref<16x64xf32, #tpu.memory_space<vmem>>, %arg15: memref<64x64xf32, #tpu.memory_space<vmem>>, %arg16: memref<1x64xf32, #tpu.memory_space<vmem>>, %arg17: memref<1x64xf32, #tpu.memory_space<vmem>>, %arg18: memref<64x64xf32, #tpu.memory_space<vmem>>, %arg19: memref<64x64xf32, #tpu.memory_space<vmem>>, %arg20: memref<1x64xf32, #tpu.memory_space<vmem>>, %arg21: memref<1x64xf32, #tpu.memory_space<vmem>>, %arg22: memref<64x64xf32, #tpu.memory_space<vmem>>, %arg23: memref<64x64xf32, #tpu.memory_space<vmem>>, %arg24: memref<1x64xf32, #tpu.memory_space<vmem>>, %arg25: memref<1x64xf32, #tpu.memory_space<vmem>>, %arg26: memref<64x48xf32, #tpu.memory_space<vmem>>, %arg27: memref<48x64xf32, #tpu.memory_space<vmem>>, %arg28: memref<64x64xf32, #tpu.memory_space<vmem>>, %arg29: memref<64x64xf32, #tpu.memory_space<vmem>>, %arg30: memref<1x64xf32, #tpu.memory_space<vmem>>, %arg31: memref<1x64xf32, #tpu.memory_space<vmem>>, %arg32: memref<64x64xf32, #tpu.memory_space<vmem>>, %arg33: memref<64x64xf32, #tpu.memory_space<vmem>>, %arg34: memref<1x64xf32, #tpu.memory_space<vmem>>, %arg35: memref<1x64xf32, #tpu.memory_space<vmem>>, %arg36: memref<64x16xf32, #tpu.memory_space<vmem>>, %arg37: memref<16x16xf32, #tpu.memory_space<vmem>>, %arg38: memref<1x16xf32, #tpu.memory_space<vmem>>, %arg39: memref<1x16xf32, #tpu.memory_space<vmem>>, %arg40: memref<8x48xf32, #tpu.memory_space<vmem>>, %arg41: memref<8x16xf32, #tpu.memory_space<vmem>>, %arg42: memref<8x16xf32, #tpu.memory_space<vmem>>) attributes {dimension_semantics = [], scalar_prefetch = 0 : i64, scratch_operands = 0 : i64, tpu.core_type = #tpu.core_type<tc>} {
    %c0 = arith.constant 0 : index
    %c0_0 = arith.constant 0 : index
    %0 = vector.load %arg0[%c0, %c0_0] : memref<8x48xf32, #tpu.memory_space<vmem>>, vector<8x48xf32>
    %c0_1 = arith.constant 0 : index
    %c0_2 = arith.constant 0 : index
    %1 = vector.load %arg1[%c0_1, %c0_2] : memref<48x64xf32, #tpu.memory_space<vmem>>, vector<48x64xf32>
    %cst = arith.constant dense<0.000000e+00> : vector<8x64xf32>
    %2 = tpu.matmul %0, %1, %cst {dimension_numbers = #tpu.dot_dimension_numbers<[1], [0], [0], [1], [0, 0, 1, 1], [], []>} : vector<8x48xf32>, vector<48x64xf32>, vector<8x64xf32> -> vector<8x64xf32>
    %cst_3 = arith.constant 0.000000e+00 : f32
    %3 = vector.broadcast %cst_3 : f32 to vector<8x64xf32>
    %4 = arith.cmpf oge, %2, %3 : vector<8x64xf32>
    %cst_4 = arith.constant 2.000000e-01 : f32
    %5 = vector.broadcast %cst_4 : f32 to vector<8x64xf32>
    %6 = arith.mulf %5, %2 : vector<8x64xf32>
    %7 = arith.select %4, %2, %6 : vector<8x64xi1>, vector<8x64xf32>
    %c0_5 = arith.constant 0 : index
    %c0_6 = arith.constant 0 : index
    %8 = vector.load %arg2[%c0_5, %c0_6] : memref<64x64xf32, #tpu.memory_space<vmem>>, vector<64x64xf32>
    %cst_7 = arith.constant dense<0.000000e+00> : vector<8x64xf32>
    %9 = tpu.matmul %7, %8, %cst_7 {dimension_numbers = #tpu.dot_dimension_numbers<[1], [0], [0], [1], [0, 0, 1, 1], [], []>} : vector<8x64xf32>, vector<64x64xf32>, vector<8x64xf32> -> vector<8x64xf32>
    %c0_8 = arith.constant 0 : index
    %c0_9 = arith.constant 0 : index
    %10 = vector.load %arg3[%c0_8, %c0_9] : memref<64x64xf32, #tpu.memory_space<vmem>>, vector<64x64xf32>
    %c0_10 = arith.constant 0 : index
    %c0_11 = arith.constant 0 : index
    %11 = vector.load %arg4[%c0_10, %c0_11] : memref<1x64xf32, #tpu.memory_space<vmem>>, vector<1x64xf32>
    %c0_12 = arith.constant 0 : index
    %c0_13 = arith.constant 0 : index
    %12 = vector.load %arg5[%c0_12, %c0_13] : memref<1x64xf32, #tpu.memory_space<vmem>>, vector<1x64xf32>
    %cst_14 = arith.constant dense<0.000000e+00> : vector<8x64xf32>
    %13 = tpu.matmul %9, %10, %cst_14 {dimension_numbers = #tpu.dot_dimension_numbers<[1], [0], [0], [1], [0, 0, 1, 1], [], []>} : vector<8x64xf32>, vector<64x64xf32>, vector<8x64xf32> -> vector<8x64xf32>
    %cst_15 = arith.constant dense<0.000000e+00> : vector<64xf32>
    %14 = vector.multi_reduction <add>, %13, %cst_15 [0] : vector<8x64xf32> to vector<64xf32>
    %15 = vector.shape_cast %14 : vector<64xf32> to vector<1x64xf32>
    %cst_16 = arith.constant 8.000000e+00 : f32
    %16 = vector.broadcast %cst_16 : f32 to vector<1x64xf32>
    %17 = arith.divf %15, %16 : vector<1x64xf32>
    %18 = vector.broadcast %17 : vector<1x64xf32> to vector<8x64xf32>
    %19 = arith.subf %9, %18 : vector<8x64xf32>
    %20 = arith.mulf %19, %19 : vector<8x64xf32>
    %cst_17 = arith.constant dense<0.000000e+00> : vector<8x64xf32>
    %21 = tpu.matmul %20, %10, %cst_17 {dimension_numbers = #tpu.dot_dimension_numbers<[1], [0], [0], [1], [0, 0, 1, 1], [], []>} : vector<8x64xf32>, vector<64x64xf32>, vector<8x64xf32> -> vector<8x64xf32>
    %cst_18 = arith.constant dense<0.000000e+00> : vector<64xf32>
    %22 = vector.multi_reduction <add>, %21, %cst_18 [0] : vector<8x64xf32> to vector<64xf32>
    %23 = vector.shape_cast %22 : vector<64xf32> to vector<1x64xf32>
    %cst_19 = arith.constant 8.000000e+00 : f32
    %24 = vector.broadcast %cst_19 : f32 to vector<1x64xf32>
    %25 = arith.divf %23, %24 : vector<1x64xf32>
    %cst_20 = arith.constant 9.99999974E-6 : f32
    %26 = vector.broadcast %cst_20 : f32 to vector<1x64xf32>
    %27 = arith.addf %25, %26 : vector<1x64xf32>
    %28 = math.rsqrt %27 : vector<1x64xf32>
    %29 = vector.broadcast %28 : vector<1x64xf32> to vector<8x64xf32>
    %30 = arith.mulf %19, %29 : vector<8x64xf32>
    %31 = vector.broadcast %11 : vector<1x64xf32> to vector<8x64xf32>
    %32 = arith.mulf %30, %31 : vector<8x64xf32>
    %33 = vector.broadcast %12 : vector<1x64xf32> to vector<8x64xf32>
    %34 = arith.addf %32, %33 : vector<8x64xf32>
    %cst_21 = arith.constant 0.000000e+00 : f32
    %35 = vector.broadcast %cst_21 : f32 to vector<8x64xf32>
    %36 = arith.cmpf oge, %34, %35 : vector<8x64xf32>
    %cst_22 = arith.constant 2.000000e-01 : f32
    %37 = vector.broadcast %cst_22 : f32 to vector<8x64xf32>
    %38 = arith.mulf %37, %34 : vector<8x64xf32>
    %39 = arith.select %36, %34, %38 : vector<8x64xi1>, vector<8x64xf32>
    %c0_23 = arith.constant 0 : index
    %c0_24 = arith.constant 0 : index
    %40 = vector.load %arg6[%c0_23, %c0_24] : memref<64x64xf32, #tpu.memory_space<vmem>>, vector<64x64xf32>
    %cst_25 = arith.constant dense<0.000000e+00> : vector<8x64xf32>
    %41 = tpu.matmul %39, %40, %cst_25 {dimension_numbers = #tpu.dot_dimension_numbers<[1], [0], [0], [1], [0, 0, 1, 1], [], []>} : vector<8x64xf32>, vector<64x64xf32>, vector<8x64xf32> -> vector<8x64xf32>
    %c0_26 = arith.constant 0 : index
    %c0_27 = arith.constant 0 : index
    %42 = vector.load %arg7[%c0_26, %c0_27] : memref<64x64xf32, #tpu.memory_space<vmem>>, vector<64x64xf32>
    %c0_28 = arith.constant 0 : index
    %c0_29 = arith.constant 0 : index
    %43 = vector.load %arg8[%c0_28, %c0_29] : memref<1x64xf32, #tpu.memory_space<vmem>>, vector<1x64xf32>
    %c0_30 = arith.constant 0 : index
    %c0_31 = arith.constant 0 : index
    %44 = vector.load %arg9[%c0_30, %c0_31] : memref<1x64xf32, #tpu.memory_space<vmem>>, vector<1x64xf32>
    %cst_32 = arith.constant dense<0.000000e+00> : vector<8x64xf32>
    %45 = tpu.matmul %41, %42, %cst_32 {dimension_numbers = #tpu.dot_dimension_numbers<[1], [0], [0], [1], [0, 0, 1, 1], [], []>} : vector<8x64xf32>, vector<64x64xf32>, vector<8x64xf32> -> vector<8x64xf32>
    %cst_33 = arith.constant dense<0.000000e+00> : vector<64xf32>
    %46 = vector.multi_reduction <add>, %45, %cst_33 [0] : vector<8x64xf32> to vector<64xf32>
    %47 = vector.shape_cast %46 : vector<64xf32> to vector<1x64xf32>
    %cst_34 = arith.constant 8.000000e+00 : f32
    %48 = vector.broadcast %cst_34 : f32 to vector<1x64xf32>
    %49 = arith.divf %47, %48 : vector<1x64xf32>
    %50 = vector.broadcast %49 : vector<1x64xf32> to vector<8x64xf32>
    %51 = arith.subf %41, %50 : vector<8x64xf32>
    %52 = arith.mulf %51, %51 : vector<8x64xf32>
    %cst_35 = arith.constant dense<0.000000e+00> : vector<8x64xf32>
    %53 = tpu.matmul %52, %42, %cst_35 {dimension_numbers = #tpu.dot_dimension_numbers<[1], [0], [0], [1], [0, 0, 1, 1], [], []>} : vector<8x64xf32>, vector<64x64xf32>, vector<8x64xf32> -> vector<8x64xf32>
    %cst_36 = arith.constant dense<0.000000e+00> : vector<64xf32>
    %54 = vector.multi_reduction <add>, %53, %cst_36 [0] : vector<8x64xf32> to vector<64xf32>
    %55 = vector.shape_cast %54 : vector<64xf32> to vector<1x64xf32>
    %cst_37 = arith.constant 8.000000e+00 : f32
    %56 = vector.broadcast %cst_37 : f32 to vector<1x64xf32>
    %57 = arith.divf %55, %56 : vector<1x64xf32>
    %cst_38 = arith.constant 9.99999974E-6 : f32
    %58 = vector.broadcast %cst_38 : f32 to vector<1x64xf32>
    %59 = arith.addf %57, %58 : vector<1x64xf32>
    %60 = math.rsqrt %59 : vector<1x64xf32>
    %61 = vector.broadcast %60 : vector<1x64xf32> to vector<8x64xf32>
    %62 = arith.mulf %51, %61 : vector<8x64xf32>
    %63 = vector.broadcast %43 : vector<1x64xf32> to vector<8x64xf32>
    %64 = arith.mulf %62, %63 : vector<8x64xf32>
    %65 = vector.broadcast %44 : vector<1x64xf32> to vector<8x64xf32>
    %66 = arith.addf %64, %65 : vector<8x64xf32>
    %cst_39 = arith.constant 0.000000e+00 : f32
    %67 = vector.broadcast %cst_39 : f32 to vector<8x64xf32>
    %68 = arith.cmpf oge, %66, %67 : vector<8x64xf32>
    %cst_40 = arith.constant 2.000000e-01 : f32
    %69 = vector.broadcast %cst_40 : f32 to vector<8x64xf32>
    %70 = arith.mulf %69, %66 : vector<8x64xf32>
    %71 = arith.select %68, %66, %70 : vector<8x64xi1>, vector<8x64xf32>
    %c0_41 = arith.constant 0 : index
    %c0_42 = arith.constant 0 : index
    %72 = vector.load %arg10[%c0_41, %c0_42] : memref<64x16xf32, #tpu.memory_space<vmem>>, vector<64x16xf32>
    %cst_43 = arith.constant dense<0.000000e+00> : vector<8x16xf32>
    %73 = tpu.matmul %71, %72, %cst_43 {dimension_numbers = #tpu.dot_dimension_numbers<[1], [0], [0], [1], [0, 0, 1, 1], [], []>} : vector<8x64xf32>, vector<64x16xf32>, vector<8x16xf32> -> vector<8x16xf32>
    %c0_44 = arith.constant 0 : index
    %c0_45 = arith.constant 0 : index
    %74 = vector.load %arg11[%c0_44, %c0_45] : memref<16x16xf32, #tpu.memory_space<vmem>>, vector<16x16xf32>
    %c0_46 = arith.constant 0 : index
    %c0_47 = arith.constant 0 : index
    %75 = vector.load %arg12[%c0_46, %c0_47] : memref<1x16xf32, #tpu.memory_space<vmem>>, vector<1x16xf32>
    %c0_48 = arith.constant 0 : index
    %c0_49 = arith.constant 0 : index
    %76 = vector.load %arg13[%c0_48, %c0_49] : memref<1x16xf32, #tpu.memory_space<vmem>>, vector<1x16xf32>
    %cst_50 = arith.constant dense<0.000000e+00> : vector<8x16xf32>
    %77 = tpu.matmul %73, %74, %cst_50 {dimension_numbers = #tpu.dot_dimension_numbers<[1], [0], [0], [1], [0, 0, 1, 1], [], []>} : vector<8x16xf32>, vector<16x16xf32>, vector<8x16xf32> -> vector<8x16xf32>
    %cst_51 = arith.constant dense<0.000000e+00> : vector<16xf32>
    %78 = vector.multi_reduction <add>, %77, %cst_51 [0] : vector<8x16xf32> to vector<16xf32>
    %79 = vector.shape_cast %78 : vector<16xf32> to vector<1x16xf32>
    %cst_52 = arith.constant 8.000000e+00 : f32
    %80 = vector.broadcast %cst_52 : f32 to vector<1x16xf32>
    %81 = arith.divf %79, %80 : vector<1x16xf32>
    %82 = vector.broadcast %81 : vector<1x16xf32> to vector<8x16xf32>
    %83 = arith.subf %73, %82 : vector<8x16xf32>
    %84 = arith.mulf %83, %83 : vector<8x16xf32>
    %cst_53 = arith.constant dense<0.000000e+00> : vector<8x16xf32>
    %85 = tpu.matmul %84, %74, %cst_53 {dimension_numbers = #tpu.dot_dimension_numbers<[1], [0], [0], [1], [0, 0, 1, 1], [], []>} : vector<8x16xf32>, vector<16x16xf32>, vector<8x16xf32> -> vector<8x16xf32>
    %cst_54 = arith.constant dense<0.000000e+00> : vector<16xf32>
    %86 = vector.multi_reduction <add>, %85, %cst_54 [0] : vector<8x16xf32> to vector<16xf32>
    %87 = vector.shape_cast %86 : vector<16xf32> to vector<1x16xf32>
    %cst_55 = arith.constant 8.000000e+00 : f32
    %88 = vector.broadcast %cst_55 : f32 to vector<1x16xf32>
    %89 = arith.divf %87, %88 : vector<1x16xf32>
    %cst_56 = arith.constant 9.99999974E-6 : f32
    %90 = vector.broadcast %cst_56 : f32 to vector<1x16xf32>
    %91 = arith.addf %89, %90 : vector<1x16xf32>
    %92 = math.rsqrt %91 : vector<1x16xf32>
    %93 = vector.broadcast %92 : vector<1x16xf32> to vector<8x16xf32>
    %94 = arith.mulf %83, %93 : vector<8x16xf32>
    %95 = vector.broadcast %75 : vector<1x16xf32> to vector<8x16xf32>
    %96 = arith.mulf %94, %95 : vector<8x16xf32>
    %97 = vector.broadcast %76 : vector<1x16xf32> to vector<8x16xf32>
    %98 = arith.addf %96, %97 : vector<8x16xf32>
    %cst_57 = arith.constant 0.000000e+00 : f32
    %99 = vector.broadcast %cst_57 : f32 to vector<8x16xf32>
    %100 = arith.cmpf oge, %98, %99 : vector<8x16xf32>
    %cst_58 = arith.constant 2.000000e-01 : f32
    %101 = vector.broadcast %cst_58 : f32 to vector<8x16xf32>
    %102 = arith.mulf %101, %98 : vector<8x16xf32>
    %103 = arith.select %100, %98, %102 : vector<8x16xi1>, vector<8x16xf32>
    %c0_59 = arith.constant 0 : index
    %c0_60 = arith.constant 0 : index
    %104 = vector.load %arg41[%c0_59, %c0_60] : memref<8x16xf32, #tpu.memory_space<vmem>>, vector<8x16xf32>
    tpu.vector_store %arg41[%c0_59, %c0_60], %103 {strides = array<i32>} : memref<8x16xf32, #tpu.memory_space<vmem>>, vector<8x16xf32>,
    %c0_61 = arith.constant 0 : index
    %c0_62 = arith.constant 0 : index
    %105 = vector.load %arg14[%c0_61, %c0_62] : memref<16x64xf32, #tpu.memory_space<vmem>>, vector<16x64xf32>
    %cst_63 = arith.constant dense<0.000000e+00> : vector<8x64xf32>
    %106 = tpu.matmul %103, %105, %cst_63 {dimension_numbers = #tpu.dot_dimension_numbers<[1], [0], [0], [1], [0, 0, 1, 1], [], []>} : vector<8x16xf32>, vector<16x64xf32>, vector<8x64xf32> -> vector<8x64xf32>
    %c0_64 = arith.constant 0 : index
    %c0_65 = arith.constant 0 : index
    %107 = vector.load %arg15[%c0_64, %c0_65] : memref<64x64xf32, #tpu.memory_space<vmem>>, vector<64x64xf32>
    %c0_66 = arith.constant 0 : index
    %c0_67 = arith.constant 0 : index
    %108 = vector.load %arg16[%c0_66, %c0_67] : memref<1x64xf32, #tpu.memory_space<vmem>>, vector<1x64xf32>
    %c0_68 = arith.constant 0 : index
    %c0_69 = arith.constant 0 : index
    %109 = vector.load %arg17[%c0_68, %c0_69] : memref<1x64xf32, #tpu.memory_space<vmem>>, vector<1x64xf32>
    %cst_70 = arith.constant dense<0.000000e+00> : vector<8x64xf32>
    %110 = tpu.matmul %106, %107, %cst_70 {dimension_numbers = #tpu.dot_dimension_numbers<[1], [0], [0], [1], [0, 0, 1, 1], [], []>} : vector<8x64xf32>, vector<64x64xf32>, vector<8x64xf32> -> vector<8x64xf32>
    %cst_71 = arith.constant dense<0.000000e+00> : vector<64xf32>
    %111 = vector.multi_reduction <add>, %110, %cst_71 [0] : vector<8x64xf32> to vector<64xf32>
    %112 = vector.shape_cast %111 : vector<64xf32> to vector<1x64xf32>
    %cst_72 = arith.constant 8.000000e+00 : f32
    %113 = vector.broadcast %cst_72 : f32 to vector<1x64xf32>
    %114 = arith.divf %112, %113 : vector<1x64xf32>
    %115 = vector.broadcast %114 : vector<1x64xf32> to vector<8x64xf32>
    %116 = arith.subf %106, %115 : vector<8x64xf32>
    %117 = arith.mulf %116, %116 : vector<8x64xf32>
    %cst_73 = arith.constant dense<0.000000e+00> : vector<8x64xf32>
    %118 = tpu.matmul %117, %107, %cst_73 {dimension_numbers = #tpu.dot_dimension_numbers<[1], [0], [0], [1], [0, 0, 1, 1], [], []>} : vector<8x64xf32>, vector<64x64xf32>, vector<8x64xf32> -> vector<8x64xf32>
    %cst_74 = arith.constant dense<0.000000e+00> : vector<64xf32>
    %119 = vector.multi_reduction <add>, %118, %cst_74 [0] : vector<8x64xf32> to vector<64xf32>
    %120 = vector.shape_cast %119 : vector<64xf32> to vector<1x64xf32>
    %cst_75 = arith.constant 8.000000e+00 : f32
    %121 = vector.broadcast %cst_75 : f32 to vector<1x64xf32>
    %122 = arith.divf %120, %121 : vector<1x64xf32>
    %cst_76 = arith.constant 9.99999974E-6 : f32
    %123 = vector.broadcast %cst_76 : f32 to vector<1x64xf32>
    %124 = arith.addf %122, %123 : vector<1x64xf32>
    %125 = math.rsqrt %124 : vector<1x64xf32>
    %126 = vector.broadcast %125 : vector<1x64xf32> to vector<8x64xf32>
    %127 = arith.mulf %116, %126 : vector<8x64xf32>
    %128 = vector.broadcast %108 : vector<1x64xf32> to vector<8x64xf32>
    %129 = arith.mulf %127, %128 : vector<8x64xf32>
    %130 = vector.broadcast %109 : vector<1x64xf32> to vector<8x64xf32>
    %131 = arith.addf %129, %130 : vector<8x64xf32>
    %cst_77 = arith.constant 0.000000e+00 : f32
    %132 = vector.broadcast %cst_77 : f32 to vector<8x64xf32>
    %133 = arith.maximumf %131, %132 : vector<8x64xf32>
    %c0_78 = arith.constant 0 : index
    %c0_79 = arith.constant 0 : index
    %134 = vector.load %arg18[%c0_78, %c0_79] : memref<64x64xf32, #tpu.memory_space<vmem>>, vector<64x64xf32>
    %cst_80 = arith.constant dense<0.000000e+00> : vector<8x64xf32>
    %135 = tpu.matmul %133, %134, %cst_80 {dimension_numbers = #tpu.dot_dimension_numbers<[1], [0], [0], [1], [0, 0, 1, 1], [], []>} : vector<8x64xf32>, vector<64x64xf32>, vector<8x64xf32> -> vector<8x64xf32>
    %c0_81 = arith.constant 0 : index
    %c0_82 = arith.constant 0 : index
    %136 = vector.load %arg19[%c0_81, %c0_82] : memref<64x64xf32, #tpu.memory_space<vmem>>, vector<64x64xf32>
    %c0_83 = arith.constant 0 : index
    %c0_84 = arith.constant 0 : index
    %137 = vector.load %arg20[%c0_83, %c0_84] : memref<1x64xf32, #tpu.memory_space<vmem>>, vector<1x64xf32>
    %c0_85 = arith.constant 0 : index
    %c0_86 = arith.constant 0 : index
    %138 = vector.load %arg21[%c0_85, %c0_86] : memref<1x64xf32, #tpu.memory_space<vmem>>, vector<1x64xf32>
    %cst_87 = arith.constant dense<0.000000e+00> : vector<8x64xf32>
    %139 = tpu.matmul %135, %136, %cst_87 {dimension_numbers = #tpu.dot_dimension_numbers<[1], [0], [0], [1], [0, 0, 1, 1], [], []>} : vector<8x64xf32>, vector<64x64xf32>, vector<8x64xf32> -> vector<8x64xf32>
    %cst_88 = arith.constant dense<0.000000e+00> : vector<64xf32>
    %140 = vector.multi_reduction <add>, %139, %cst_88 [0] : vector<8x64xf32> to vector<64xf32>
    %141 = vector.shape_cast %140 : vector<64xf32> to vector<1x64xf32>
    %cst_89 = arith.constant 8.000000e+00 : f32
    %142 = vector.broadcast %cst_89 : f32 to vector<1x64xf32>
    %143 = arith.divf %141, %142 : vector<1x64xf32>
    %144 = vector.broadcast %143 : vector<1x64xf32> to vector<8x64xf32>
    %145 = arith.subf %135, %144 : vector<8x64xf32>
    %146 = arith.mulf %145, %145 : vector<8x64xf32>
    %cst_90 = arith.constant dense<0.000000e+00> : vector<8x64xf32>
    %147 = tpu.matmul %146, %136, %cst_90 {dimension_numbers = #tpu.dot_dimension_numbers<[1], [0], [0], [1], [0, 0, 1, 1], [], []>} : vector<8x64xf32>, vector<64x64xf32>, vector<8x64xf32> -> vector<8x64xf32>
    %cst_91 = arith.constant dense<0.000000e+00> : vector<64xf32>
    %148 = vector.multi_reduction <add>, %147, %cst_91 [0] : vector<8x64xf32> to vector<64xf32>
    %149 = vector.shape_cast %148 : vector<64xf32> to vector<1x64xf32>
    %cst_92 = arith.constant 8.000000e+00 : f32
    %150 = vector.broadcast %cst_92 : f32 to vector<1x64xf32>
    %151 = arith.divf %149, %150 : vector<1x64xf32>
    %cst_93 = arith.constant 9.99999974E-6 : f32
    %152 = vector.broadcast %cst_93 : f32 to vector<1x64xf32>
    %153 = arith.addf %151, %152 : vector<1x64xf32>
    %154 = math.rsqrt %153 : vector<1x64xf32>
    %155 = vector.broadcast %154 : vector<1x64xf32> to vector<8x64xf32>
    %156 = arith.mulf %145, %155 : vector<8x64xf32>
    %157 = vector.broadcast %137 : vector<1x64xf32> to vector<8x64xf32>
    %158 = arith.mulf %156, %157 : vector<8x64xf32>
    %159 = vector.broadcast %138 : vector<1x64xf32> to vector<8x64xf32>
    %160 = arith.addf %158, %159 : vector<8x64xf32>
    %cst_94 = arith.constant 0.000000e+00 : f32
    %161 = vector.broadcast %cst_94 : f32 to vector<8x64xf32>
    %162 = arith.maximumf %160, %161 : vector<8x64xf32>
    %c0_95 = arith.constant 0 : index
    %c0_96 = arith.constant 0 : index
    %163 = vector.load %arg22[%c0_95, %c0_96] : memref<64x64xf32, #tpu.memory_space<vmem>>, vector<64x64xf32>
    %cst_97 = arith.constant dense<0.000000e+00> : vector<8x64xf32>
    %164 = tpu.matmul %162, %163, %cst_97 {dimension_numbers = #tpu.dot_dimension_numbers<[1], [0], [0], [1], [0, 0, 1, 1], [], []>} : vector<8x64xf32>, vector<64x64xf32>, vector<8x64xf32> -> vector<8x64xf32>
    %c0_98 = arith.constant 0 : index
    %c0_99 = arith.constant 0 : index
    %165 = vector.load %arg23[%c0_98, %c0_99] : memref<64x64xf32, #tpu.memory_space<vmem>>, vector<64x64xf32>
    %c0_100 = arith.constant 0 : index
    %c0_101 = arith.constant 0 : index
    %166 = vector.load %arg24[%c0_100, %c0_101] : memref<1x64xf32, #tpu.memory_space<vmem>>, vector<1x64xf32>
    %c0_102 = arith.constant 0 : index
    %c0_103 = arith.constant 0 : index
    %167 = vector.load %arg25[%c0_102, %c0_103] : memref<1x64xf32, #tpu.memory_space<vmem>>, vector<1x64xf32>
    %cst_104 = arith.constant dense<0.000000e+00> : vector<8x64xf32>
    %168 = tpu.matmul %164, %165, %cst_104 {dimension_numbers = #tpu.dot_dimension_numbers<[1], [0], [0], [1], [0, 0, 1, 1], [], []>} : vector<8x64xf32>, vector<64x64xf32>, vector<8x64xf32> -> vector<8x64xf32>
    %cst_105 = arith.constant dense<0.000000e+00> : vector<64xf32>
    %169 = vector.multi_reduction <add>, %168, %cst_105 [0] : vector<8x64xf32> to vector<64xf32>
    %170 = vector.shape_cast %169 : vector<64xf32> to vector<1x64xf32>
    %cst_106 = arith.constant 8.000000e+00 : f32
    %171 = vector.broadcast %cst_106 : f32 to vector<1x64xf32>
    %172 = arith.divf %170, %171 : vector<1x64xf32>
    %173 = vector.broadcast %172 : vector<1x64xf32> to vector<8x64xf32>
    %174 = arith.subf %164, %173 : vector<8x64xf32>
    %175 = arith.mulf %174, %174 : vector<8x64xf32>
    %cst_107 = arith.constant dense<0.000000e+00> : vector<8x64xf32>
    %176 = tpu.matmul %175, %165, %cst_107 {dimension_numbers = #tpu.dot_dimension_numbers<[1], [0], [0], [1], [0, 0, 1, 1], [], []>} : vector<8x64xf32>, vector<64x64xf32>, vector<8x64xf32> -> vector<8x64xf32>
    %cst_108 = arith.constant dense<0.000000e+00> : vector<64xf32>
    %177 = vector.multi_reduction <add>, %176, %cst_108 [0] : vector<8x64xf32> to vector<64xf32>
    %178 = vector.shape_cast %177 : vector<64xf32> to vector<1x64xf32>
    %cst_109 = arith.constant 8.000000e+00 : f32
    %179 = vector.broadcast %cst_109 : f32 to vector<1x64xf32>
    %180 = arith.divf %178, %179 : vector<1x64xf32>
    %cst_110 = arith.constant 9.99999974E-6 : f32
    %181 = vector.broadcast %cst_110 : f32 to vector<1x64xf32>
    %182 = arith.addf %180, %181 : vector<1x64xf32>
    %183 = math.rsqrt %182 : vector<1x64xf32>
    %184 = vector.broadcast %183 : vector<1x64xf32> to vector<8x64xf32>
    %185 = arith.mulf %174, %184 : vector<8x64xf32>
    %186 = vector.broadcast %166 : vector<1x64xf32> to vector<8x64xf32>
    %187 = arith.mulf %185, %186 : vector<8x64xf32>
    %188 = vector.broadcast %167 : vector<1x64xf32> to vector<8x64xf32>
    %189 = arith.addf %187, %188 : vector<8x64xf32>
    %cst_111 = arith.constant 0.000000e+00 : f32
    %190 = vector.broadcast %cst_111 : f32 to vector<8x64xf32>
    %191 = arith.maximumf %189, %190 : vector<8x64xf32>
    %c0_112 = arith.constant 0 : index
    %c0_113 = arith.constant 0 : index
    %192 = vector.load %arg26[%c0_112, %c0_113] : memref<64x48xf32, #tpu.memory_space<vmem>>, vector<64x48xf32>
    %cst_114 = arith.constant dense<0.000000e+00> : vector<8x48xf32>
    %193 = tpu.matmul %191, %192, %cst_114 {dimension_numbers = #tpu.dot_dimension_numbers<[1], [0], [0], [1], [0, 0, 1, 1], [], []>} : vector<8x64xf32>, vector<64x48xf32>, vector<8x48xf32> -> vector<8x48xf32>
    %194 = math.absf %193 : vector<8x48xf32>
    %cst_115 = arith.constant 0.000000e+00 : f32
    %195 = vector.broadcast %cst_115 : f32 to vector<8x48xf32>
    %196 = arith.subf %195, %194 : vector<8x48xf32>
    %197 = math.exp %196 : vector<8x48xf32>
    %cst_116 = arith.constant 1.000000e+00 : f32
    %198 = vector.broadcast %cst_116 : f32 to vector<8x48xf32>
    %199 = arith.addf %198, %197 : vector<8x48xf32>
    %200 = tpu.reciprocal %199 : vector<8x48xf32> -> vector<8x48xf32>
    %cst_117 = arith.constant 0.000000e+00 : f32
    %201 = vector.broadcast %cst_117 : f32 to vector<8x48xf32>
    %202 = arith.cmpf oge, %193, %201 : vector<8x48xf32>
    %203 = arith.mulf %197, %200 : vector<8x48xf32>
    %204 = arith.select %202, %200, %203 : vector<8x48xi1>, vector<8x48xf32>
    %c0_118 = arith.constant 0 : index
    %c0_119 = arith.constant 0 : index
    %205 = vector.load %arg40[%c0_118, %c0_119] : memref<8x48xf32, #tpu.memory_space<vmem>>, vector<8x48xf32>
    tpu.vector_store %arg40[%c0_118, %c0_119], %204 {strides = array<i32>} : memref<8x48xf32, #tpu.memory_space<vmem>>, vector<8x48xf32>,
    %c0_120 = arith.constant 0 : index
    %c0_121 = arith.constant 0 : index
    %206 = vector.load %arg27[%c0_120, %c0_121] : memref<48x64xf32, #tpu.memory_space<vmem>>, vector<48x64xf32>
    %cst_122 = arith.constant dense<0.000000e+00> : vector<8x64xf32>
    %207 = tpu.matmul %204, %206, %cst_122 {dimension_numbers = #tpu.dot_dimension_numbers<[1], [0], [0], [1], [0, 0, 1, 1], [], []>} : vector<8x48xf32>, vector<48x64xf32>, vector<8x64xf32> -> vector<8x64xf32>
    %cst_123 = arith.constant 0.000000e+00 : f32
    %208 = vector.broadcast %cst_123 : f32 to vector<8x64xf32>
    %209 = arith.cmpf oge, %207, %208 : vector<8x64xf32>
    %cst_124 = arith.constant 2.000000e-01 : f32
    %210 = vector.broadcast %cst_124 : f32 to vector<8x64xf32>
    %211 = arith.mulf %210, %207 : vector<8x64xf32>
    %212 = arith.select %209, %207, %211 : vector<8x64xi1>, vector<8x64xf32>
    %c0_125 = arith.constant 0 : index
    %c0_126 = arith.constant 0 : index
    %213 = vector.load %arg28[%c0_125, %c0_126] : memref<64x64xf32, #tpu.memory_space<vmem>>, vector<64x64xf32>
    %cst_127 = arith.constant dense<0.000000e+00> : vector<8x64xf32>
    %214 = tpu.matmul %212, %213, %cst_127 {dimension_numbers = #tpu.dot_dimension_numbers<[1], [0], [0], [1], [0, 0, 1, 1], [], []>} : vector<8x64xf32>, vector<64x64xf32>, vector<8x64xf32> -> vector<8x64xf32>
    %c0_128 = arith.constant 0 : index
    %c0_129 = arith.constant 0 : index
    %215 = vector.load %arg29[%c0_128, %c0_129] : memref<64x64xf32, #tpu.memory_space<vmem>>, vector<64x64xf32>
    %c0_130 = arith.constant 0 : index
    %c0_131 = arith.constant 0 : index
    %216 = vector.load %arg30[%c0_130, %c0_131] : memref<1x64xf32, #tpu.memory_space<vmem>>, vector<1x64xf32>
    %c0_132 = arith.constant 0 : index
    %c0_133 = arith.constant 0 : index
    %217 = vector.load %arg31[%c0_132, %c0_133] : memref<1x64xf32, #tpu.memory_space<vmem>>, vector<1x64xf32>
    %cst_134 = arith.constant dense<0.000000e+00> : vector<8x64xf32>
    %218 = tpu.matmul %214, %215, %cst_134 {dimension_numbers = #tpu.dot_dimension_numbers<[1], [0], [0], [1], [0, 0, 1, 1], [], []>} : vector<8x64xf32>, vector<64x64xf32>, vector<8x64xf32> -> vector<8x64xf32>
    %cst_135 = arith.constant dense<0.000000e+00> : vector<64xf32>
    %219 = vector.multi_reduction <add>, %218, %cst_135 [0] : vector<8x64xf32> to vector<64xf32>
    %220 = vector.shape_cast %219 : vector<64xf32> to vector<1x64xf32>
    %cst_136 = arith.constant 8.000000e+00 : f32
    %221 = vector.broadcast %cst_136 : f32 to vector<1x64xf32>
    %222 = arith.divf %220, %221 : vector<1x64xf32>
    %223 = vector.broadcast %222 : vector<1x64xf32> to vector<8x64xf32>
    %224 = arith.subf %214, %223 : vector<8x64xf32>
    %225 = arith.mulf %224, %224 : vector<8x64xf32>
    %cst_137 = arith.constant dense<0.000000e+00> : vector<8x64xf32>
    %226 = tpu.matmul %225, %215, %cst_137 {dimension_numbers = #tpu.dot_dimension_numbers<[1], [0], [0], [1], [0, 0, 1, 1], [], []>} : vector<8x64xf32>, vector<64x64xf32>, vector<8x64xf32> -> vector<8x64xf32>
    %cst_138 = arith.constant dense<0.000000e+00> : vector<64xf32>
    %227 = vector.multi_reduction <add>, %226, %cst_138 [0] : vector<8x64xf32> to vector<64xf32>
    %228 = vector.shape_cast %227 : vector<64xf32> to vector<1x64xf32>
    %cst_139 = arith.constant 8.000000e+00 : f32
    %229 = vector.broadcast %cst_139 : f32 to vector<1x64xf32>
    %230 = arith.divf %228, %229 : vector<1x64xf32>
    %cst_140 = arith.constant 9.99999974E-6 : f32
    %231 = vector.broadcast %cst_140 : f32 to vector<1x64xf32>
    %232 = arith.addf %230, %231 : vector<1x64xf32>
    %233 = math.rsqrt %232 : vector<1x64xf32>
    %234 = vector.broadcast %233 : vector<1x64xf32> to vector<8x64xf32>
    %235 = arith.mulf %224, %234 : vector<8x64xf32>
    %236 = vector.broadcast %216 : vector<1x64xf32> to vector<8x64xf32>
    %237 = arith.mulf %235, %236 : vector<8x64xf32>
    %238 = vector.broadcast %217 : vector<1x64xf32> to vector<8x64xf32>
    %239 = arith.addf %237, %238 : vector<8x64xf32>
    %cst_141 = arith.constant 0.000000e+00 : f32
    %240 = vector.broadcast %cst_141 : f32 to vector<8x64xf32>
    %241 = arith.cmpf oge, %239, %240 : vector<8x64xf32>
    %cst_142 = arith.constant 2.000000e-01 : f32
    %242 = vector.broadcast %cst_142 : f32 to vector<8x64xf32>
    %243 = arith.mulf %242, %239 : vector<8x64xf32>
    %244 = arith.select %241, %239, %243 : vector<8x64xi1>, vector<8x64xf32>
    %c0_143 = arith.constant 0 : index
    %c0_144 = arith.constant 0 : index
    %245 = vector.load %arg32[%c0_143, %c0_144] : memref<64x64xf32, #tpu.memory_space<vmem>>, vector<64x64xf32>
    %cst_145 = arith.constant dense<0.000000e+00> : vector<8x64xf32>
    %246 = tpu.matmul %244, %245, %cst_145 {dimension_numbers = #tpu.dot_dimension_numbers<[1], [0], [0], [1], [0, 0, 1, 1], [], []>} : vector<8x64xf32>, vector<64x64xf32>, vector<8x64xf32> -> vector<8x64xf32>
    %c0_146 = arith.constant 0 : index
    %c0_147 = arith.constant 0 : index
    %247 = vector.load %arg33[%c0_146, %c0_147] : memref<64x64xf32, #tpu.memory_space<vmem>>, vector<64x64xf32>
    %c0_148 = arith.constant 0 : index
    %c0_149 = arith.constant 0 : index
    %248 = vector.load %arg34[%c0_148, %c0_149] : memref<1x64xf32, #tpu.memory_space<vmem>>, vector<1x64xf32>
    %c0_150 = arith.constant 0 : index
    %c0_151 = arith.constant 0 : index
    %249 = vector.load %arg35[%c0_150, %c0_151] : memref<1x64xf32, #tpu.memory_space<vmem>>, vector<1x64xf32>
    %cst_152 = arith.constant dense<0.000000e+00> : vector<8x64xf32>
    %250 = tpu.matmul %246, %247, %cst_152 {dimension_numbers = #tpu.dot_dimension_numbers<[1], [0], [0], [1], [0, 0, 1, 1], [], []>} : vector<8x64xf32>, vector<64x64xf32>, vector<8x64xf32> -> vector<8x64xf32>
    %cst_153 = arith.constant dense<0.000000e+00> : vector<64xf32>
    %251 = vector.multi_reduction <add>, %250, %cst_153 [0] : vector<8x64xf32> to vector<64xf32>
    %252 = vector.shape_cast %251 : vector<64xf32> to vector<1x64xf32>
    %cst_154 = arith.constant 8.000000e+00 : f32
    %253 = vector.broadcast %cst_154 : f32 to vector<1x64xf32>
    %254 = arith.divf %252, %253 : vector<1x64xf32>
    %255 = vector.broadcast %254 : vector<1x64xf32> to vector<8x64xf32>
    %256 = arith.subf %246, %255 : vector<8x64xf32>
    %257 = arith.mulf %256, %256 : vector<8x64xf32>
    %cst_155 = arith.constant dense<0.000000e+00> : vector<8x64xf32>
    %258 = tpu.matmul %257, %247, %cst_155 {dimension_numbers = #tpu.dot_dimension_numbers<[1], [0], [0], [1], [0, 0, 1, 1], [], []>} : vector<8x64xf32>, vector<64x64xf32>, vector<8x64xf32> -> vector<8x64xf32>
    %cst_156 = arith.constant dense<0.000000e+00> : vector<64xf32>
    %259 = vector.multi_reduction <add>, %258, %cst_156 [0] : vector<8x64xf32> to vector<64xf32>
    %260 = vector.shape_cast %259 : vector<64xf32> to vector<1x64xf32>
    %cst_157 = arith.constant 8.000000e+00 : f32
    %261 = vector.broadcast %cst_157 : f32 to vector<1x64xf32>
    %262 = arith.divf %260, %261 : vector<1x64xf32>
    %cst_158 = arith.constant 9.99999974E-6 : f32
    %263 = vector.broadcast %cst_158 : f32 to vector<1x64xf32>
    %264 = arith.addf %262, %263 : vector<1x64xf32>
    %265 = math.rsqrt %264 : vector<1x64xf32>
    %266 = vector.broadcast %265 : vector<1x64xf32> to vector<8x64xf32>
    %267 = arith.mulf %256, %266 : vector<8x64xf32>
    %268 = vector.broadcast %248 : vector<1x64xf32> to vector<8x64xf32>
    %269 = arith.mulf %267, %268 : vector<8x64xf32>
    %270 = vector.broadcast %249 : vector<1x64xf32> to vector<8x64xf32>
    %271 = arith.addf %269, %270 : vector<8x64xf32>
    %cst_159 = arith.constant 0.000000e+00 : f32
    %272 = vector.broadcast %cst_159 : f32 to vector<8x64xf32>
    %273 = arith.cmpf oge, %271, %272 : vector<8x64xf32>
    %cst_160 = arith.constant 2.000000e-01 : f32
    %274 = vector.broadcast %cst_160 : f32 to vector<8x64xf32>
    %275 = arith.mulf %274, %271 : vector<8x64xf32>
    %276 = arith.select %273, %271, %275 : vector<8x64xi1>, vector<8x64xf32>
    %c0_161 = arith.constant 0 : index
    %c0_162 = arith.constant 0 : index
    %277 = vector.load %arg36[%c0_161, %c0_162] : memref<64x16xf32, #tpu.memory_space<vmem>>, vector<64x16xf32>
    %cst_163 = arith.constant dense<0.000000e+00> : vector<8x16xf32>
    %278 = tpu.matmul %276, %277, %cst_163 {dimension_numbers = #tpu.dot_dimension_numbers<[1], [0], [0], [1], [0, 0, 1, 1], [], []>} : vector<8x64xf32>, vector<64x16xf32>, vector<8x16xf32> -> vector<8x16xf32>
    %c0_164 = arith.constant 0 : index
    %c0_165 = arith.constant 0 : index
    %279 = vector.load %arg37[%c0_164, %c0_165] : memref<16x16xf32, #tpu.memory_space<vmem>>, vector<16x16xf32>
    %c0_166 = arith.constant 0 : index
    %c0_167 = arith.constant 0 : index
    %280 = vector.load %arg38[%c0_166, %c0_167] : memref<1x16xf32, #tpu.memory_space<vmem>>, vector<1x16xf32>
    %c0_168 = arith.constant 0 : index
    %c0_169 = arith.constant 0 : index
    %281 = vector.load %arg39[%c0_168, %c0_169] : memref<1x16xf32, #tpu.memory_space<vmem>>, vector<1x16xf32>
    %cst_170 = arith.constant dense<0.000000e+00> : vector<8x16xf32>
    %282 = tpu.matmul %278, %279, %cst_170 {dimension_numbers = #tpu.dot_dimension_numbers<[1], [0], [0], [1], [0, 0, 1, 1], [], []>} : vector<8x16xf32>, vector<16x16xf32>, vector<8x16xf32> -> vector<8x16xf32>
    %cst_171 = arith.constant dense<0.000000e+00> : vector<16xf32>
    %283 = vector.multi_reduction <add>, %282, %cst_171 [0] : vector<8x16xf32> to vector<16xf32>
    %284 = vector.shape_cast %283 : vector<16xf32> to vector<1x16xf32>
    %cst_172 = arith.constant 8.000000e+00 : f32
    %285 = vector.broadcast %cst_172 : f32 to vector<1x16xf32>
    %286 = arith.divf %284, %285 : vector<1x16xf32>
    %287 = vector.broadcast %286 : vector<1x16xf32> to vector<8x16xf32>
    %288 = arith.subf %278, %287 : vector<8x16xf32>
    %289 = arith.mulf %288, %288 : vector<8x16xf32>
    %cst_173 = arith.constant dense<0.000000e+00> : vector<8x16xf32>
    %290 = tpu.matmul %289, %279, %cst_173 {dimension_numbers = #tpu.dot_dimension_numbers<[1], [0], [0], [1], [0, 0, 1, 1], [], []>} : vector<8x16xf32>, vector<16x16xf32>, vector<8x16xf32> -> vector<8x16xf32>
    %cst_174 = arith.constant dense<0.000000e+00> : vector<16xf32>
    %291 = vector.multi_reduction <add>, %290, %cst_174 [0] : vector<8x16xf32> to vector<16xf32>
    %292 = vector.shape_cast %291 : vector<16xf32> to vector<1x16xf32>
    %cst_175 = arith.constant 8.000000e+00 : f32
    %293 = vector.broadcast %cst_175 : f32 to vector<1x16xf32>
    %294 = arith.divf %292, %293 : vector<1x16xf32>
    %cst_176 = arith.constant 9.99999974E-6 : f32
    %295 = vector.broadcast %cst_176 : f32 to vector<1x16xf32>
    %296 = arith.addf %294, %295 : vector<1x16xf32>
    %297 = math.rsqrt %296 : vector<1x16xf32>
    %298 = vector.broadcast %297 : vector<1x16xf32> to vector<8x16xf32>
    %299 = arith.mulf %288, %298 : vector<8x16xf32>
    %300 = vector.broadcast %280 : vector<1x16xf32> to vector<8x16xf32>
    %301 = arith.mulf %299, %300 : vector<8x16xf32>
    %302 = vector.broadcast %281 : vector<1x16xf32> to vector<8x16xf32>
    %303 = arith.addf %301, %302 : vector<8x16xf32>
    %cst_177 = arith.constant 0.000000e+00 : f32
    %304 = vector.broadcast %cst_177 : f32 to vector<8x16xf32>
    %305 = arith.cmpf oge, %303, %304 : vector<8x16xf32>
    %cst_178 = arith.constant 2.000000e-01 : f32
    %306 = vector.broadcast %cst_178 : f32 to vector<8x16xf32>
    %307 = arith.mulf %306, %303 : vector<8x16xf32>
    %308 = arith.select %305, %303, %307 : vector<8x16xi1>, vector<8x16xf32>
    %c0_179 = arith.constant 0 : index
    %c0_180 = arith.constant 0 : index
    %309 = vector.load %arg42[%c0_179, %c0_180] : memref<8x16xf32, #tpu.memory_space<vmem>>, vector<8x16xf32>
    tpu.vector_store %arg42[%c0_179, %c0_180], %308 {strides = array<i32>} : memref<8x16xf32, #tpu.memory_space<vmem>>, vector<8x16xf32>,
    return
  }
}

</mosaic_0001>

<bundles_post_ra>
// kernel: _lambda_.1
= control target key start
LH: loop header
LB: loop body
LE: loop exit
PB: predicated region body
PF: predicated region fallthrough
CT: control target
= control target key end

     0   :  { %s1679_s6 = smov 1   ;;  %s1680_s10 = smov 2   ;;  %s2207_s0 = inlined_call_operand.smem [shape: u32[43], index: -1, kind: input, shape index: {}] }
   0x1   :  { %s1732_s5 = sld [smem:[%s2207_s0]]   ;;  %s1681_s14 = smov 3  }
   0x2   :  { %s1737_s9 = sld [smem:[%s2207_s0 + %s1679_s6]]   ;;  %s1682_s18 = smov 4  }
   0x3   :  { %s1742_s13 = sld [smem:[%s2207_s0 + %s1680_s10]]   ;;  %s1683_s22 = smov 5  }
   0x4   :  { %s1747_s17 = sld [smem:[%s2207_s0 + %s1681_s14]]   ;;  %s1684_s26 = smov 6  }
   0x5   :  { %s1752_s21 = sld [smem:[%s2207_s0 + %s1682_s18]]   ;;  %s1685_s30 = smov 7  }
   0x6   :  { %s1757_s25 = sld [smem:[%s2207_s0 + %s1683_s22]]   ;;  %s1686_s4 = smov 8  }
   0x7   :  { %s1762_s29 = sld [smem:[%s2207_s0 + %s1684_s26]]   ;;  %s1687_s10 = smov 9  }
   0x8   :  { %s1767_s3 = sld [smem:[%s2207_s0 + %s1685_s30]]   ;;  %s1688_s15 = smov 10  }
   0x9   :  { %s1772_s8 = sld [smem:[%s2207_s0 + %s1686_s4]]   ;;  %s1689_s20 = smov 11  }
   0xa   :  { %s1777_s14 = sld [smem:[%s2207_s0 + %s1687_s10]]   ;;  %s1690_s26 = smov 12  }
   0xb   :  { %s1782_s19 = sld [smem:[%s2207_s0 + %s1688_s15]]   ;;  %s1691_s1 = smov 13  }
   0xc   :  { %s1787_s24 = sld [smem:[%s2207_s0 + %s1689_s20]]   ;;  %s1692_s7 = smov 14  }
   0xd   :  { %s1792_s30 = sld [smem:[%s2207_s0 + %s1690_s26]]   ;;  %s1693_s15 = smov 15  }
   0xe   :  { %s1797_s6 = sld [smem:[%s2207_s0 + %s1691_s1]]   ;;  %s1694_s22 = smov 16  }
   0xf   :  { %s1802_s12 = sld [smem:[%s2207_s0 + %s1692_s7]]   ;;  %s1695_s28 = smov 17  }
  0x10   :  { %s1807_s20 = sld [smem:[%s2207_s0 + %s1693_s15]]   ;;  %s1696_s7 = smov 18  }
  0x11   :  { %s1812_s27 = sld [smem:[%s2207_s0 + %s1694_s22]]   ;;  %s1697_s15 = smov 19  }
  0x12   :  { %s1817_s4 = sld [smem:[%s2207_s0 + %s1695_s28]]   ;;  %s1698_s22 = smov 20  }
  0x13   :  { %2220 = sst [smem:[#allocation8_spill]] %s1792_s30  ;;  %s1699_s28 = smov 21  }
  0x14   :  { %2221 = sst [smem:[#allocation9_spill]] %s1797_s6 }
  0x15   :  { %s1822_s6 = sld [smem:[%s2207_s0 + %s1696_s7]]   ;;  %s1700_s7 = smov 22  }
  0x16   :  { %s1827_s30 = sld [smem:[%s2207_s0 + %s1697_s15]]   ;;  %s1701_s15 = smov 23  }
  0x17   :  { %2222 = sst [smem:[#allocation10_spill]] %s1812_s27 }
  0x18   :  { %2223 = sst [smem:[#allocation11_spill]] %s1817_s4 }
  0x19   :  { %s1832_s27 = sld [smem:[%s2207_s0 + %s1698_s22]]   ;;  %s1702_s22 = smov 24  }
  0x1a   :  { %s1837_s4 = sld [smem:[%s2207_s0 + %s1699_s28]]   ;;  %s1703_s28 = smov 25  }
  0x1b   :  { %2224 = sst [smem:[#allocation12_spill]] %s1822_s6 }
  0x1c   :  { %2225 = sst [smem:[#allocation13_spill]] %s1827_s30 }
  0x1d   :  { %s1842_s6 = sld [smem:[%s2207_s0 + %s1700_s7]]   ;;  %s1704_s7 = smov 26  }
  0x1e   :  { %s1847_s30 = sld [smem:[%s2207_s0 + %s1701_s15]]   ;;  %s1705_s15 = smov 27  }
  0x1f   :  { %2226 = sst [smem:[#allocation14_spill]] %s1832_s27 }
  0x20   :  { %2227 = sst [smem:[#allocation15_spill]] %s1837_s4 }
  0x21   :  { %s1852_s27 = sld [smem:[%s2207_s0 + %s1702_s22]]   ;;  %s1706_s22 = smov 28  }
  0x22   :  { %s1857_s4 = sld [smem:[%s2207_s0 + %s1703_s28]]   ;;  %s1707_s28 = smov 29  }
  0x23   :  { %2228 = sst [smem:[#allocation16_spill]] %s1842_s6 }
  0x24   :  { %2229 = sst [smem:[#allocation17_spill]] %s1847_s30 }
  0x25   :  { %s1862_s6 = sld [smem:[%s2207_s0 + %s1704_s7]]   ;;  %s1708_s7 = smov 30  }
  0x26   :  { %s1867_s30 = sld [smem:[%s2207_s0 + %s1705_s15]]   ;;  %s1709_s15 = smov 31  }
  0x27   :  { %2230 = sst [smem:[#allocation18_spill]] %s1852_s27 }
  0x28   :  { %2231 = sst [smem:[#allocation19_spill]] %s1857_s4 }
  0x29   :  { %s1872_s27 = sld [smem:[%s2207_s0 + %s1706_s22]]   ;;  %s1710_s22 = smov 32  }
  0x2a   :  { %s1877_s4 = sld [smem:[%s2207_s0 + %s1707_s28]]   ;;  %s1711_s28 = smov 33  }
  0x2b   :  { %2232 = sst [smem:[#allocation20_spill]] %s1862_s6 }
  0x2c   :  { %2233 = sst [smem:[#allocation21_spill]] %s1867_s30 }
  0x2d   :  { %s1882_s6 = sld [smem:[%s2207_s0 + %s1708_s7]]   ;;  %s1712_s7 = smov 34  }
  0x2e   :  { %s1887_s30 = sld [smem:[%s2207_s0 + %s1709_s15]]   ;;  %s1713_s15 = smov 35  }
  0x2f   :  { %2234 = sst [smem:[#allocation22_spill]] %s1872_s27 }
  0x30   :  { %2235 = sst [smem:[#allocation23_spill]] %s1877_s4 }
  0x31   :  { %s1892_s27 = sld [smem:[%s2207_s0 + %s1710_s22]]   ;;  %s1714_s22 = smov 36  }
  0x32   :  { %s1897_s4 = sld [smem:[%s2207_s0 + %s1711_s28]]   ;;  %s1715_s28 = smov 37  }
  0x33   :  { %2236 = sst [smem:[#allocation24_spill]] %s1882_s6 }
  0x34   :  { %2237 = sst [smem:[#allocation25_spill]] %s1887_s30 }
  0x35   :  { %s1902_s6 = sld [smem:[%s2207_s0 + %s1712_s7]]   ;;  %s1716_s7 = smov 38  }
  0x36   :  { %s1907_s30 = sld [smem:[%s2207_s0 + %s1713_s15]]   ;;  %s1717_s15 = smov 39  }
  0x37   :  { %2238 = sst [smem:[#allocation26_spill]] %s1892_s27 }
  0x38   :  { %2239 = sst [smem:[#allocation27_spill]] %s1897_s4 }
  0x39   :  { %s1912_s27 = sld [smem:[%s2207_s0 + %s1714_s22]]   ;;  %s1718_s22 = smov 40  }
  0x3a   :  { %s1917_s4 = sld [smem:[%s2207_s0 + %s1715_s28]]   ;;  %s1719_s28 = smov 41  }
  0x3b   :  { %2240 = sst [smem:[#allocation28_spill]] %s1902_s6 }
  0x3c   :  { %2241 = sst [smem:[#allocation29_spill]] %s1907_s30 }
  0x3d   :  { %s1922_s6 = sld [smem:[%s2207_s0 + %s1716_s7]]   ;;  %s1720_s7 = smov 42  }
  0x3e   :  { %s1927_s30 = sld [smem:[%s2207_s0 + %s1717_s15]]  }
  0x3f   :  { %2242 = sst [smem:[#allocation30_spill]] %s1912_s27 }
  0x40   :  { %2243 = sst [smem:[#allocation31_spill]] %s1917_s4 }
  0x41   :  { %s1932_s27 = sld [smem:[%s2207_s0 + %s1718_s22]]  }
  0x42   :  { %s1937_s4 = sld [smem:[%s2207_s0 + %s1719_s28]]  }
  0x43   :  { %2244 = sst [smem:[#allocation32_spill]] %s1922_s6 }
  0x44   :  { %s1942_s6 = sld [smem:[%s2207_s0 + %s1720_s7]]  }
  0x45   :  { %91 = vsyncpa [#allocation3], 0  ;;  %v179_v0 = vld [vmem:[%s1737_s9 + $0x28] sm:$0xff]  ;;  %v178_v1 = vld [vmem:[%s1737_s9 + $0x20] sm:$0xff]  ;;  %vm180_vm0 = vcmask 392192  }
  0x46   :  { %194 = vmatpush.msra.mxu0 %v179_v0  ;;  %v177_v2 = vld [vmem:[%s1737_s9 + $0x18] sm:$0xff]  ;;  %v213_v4 = vld [vmem:[%s1742_s13 + $0x30] sm:$0xff]  ;;  %v212_v6 = vld [vmem:[%s1742_s13 + $0x28] sm:$0xff] }
  0x47   :  { %v214_v3 = vld [vmem:[%s1742_s13 + $0x38] sm:$0xff]  ;;  %v176_v5 = vld [vmem:[%s1737_s9 + $0x10] sm:$0xff]  ;;  %v175_v7 = vld [vmem:[%s1737_s9 + $0x8] sm:$0xff] }
  0x48   :  { %195 = vmatpush.msra.mxu0 %v178_v1  ;;  %227 = vmatpush.msra.mxu1 %v214_v3  ;;  %v211_v8 = vld [vmem:[%s1742_s13 + $0x20] sm:$0xff]  ;;  %v210_v10 = vld [vmem:[%s1742_s13 + $0x18] sm:$0xff] }
  0x49   :  { %v174_v9 = vld [vmem:[%s1737_s9] sm:$0xff] }
  0x4a   :  { %196 = vmatpush.msra.mxu0 %v177_v2  ;;  %228 = vmatpush.msra.mxu1 %v213_v4  ;;  %v173_v11 = vld [vmem:[%s1732_s5] sm:$0xff] }
  0x4c   :  { %197 = vmatpush.msra.mxu0 %v176_v5  ;;  %229 = vmatpush.msra.mxu1 %v212_v6 }
  0x4e   :  { %198 = vmatpush.msra.mxu0 %v175_v7  ;;  %230 = vmatpush.msra.mxu1 %v211_v8 }
  0x4f   :  { %92 = vsyncpa [#allocation5], 0  ;;  %v209_v12 = vld [vmem:[%s1742_s13 + $0x10] sm:$0xff]  ;;  %v208_v13 = vld [vmem:[%s1742_s13 + $0x8] sm:$0xff]  ;;  %vm215_vm2 = vcmask 523264   ;;  %v1721_v27 = vmov 8.0  }
  0x50   :  { %199 = vmatpush.msra.mxu0 %v174_v9  ;;  %231 = vmatpush.msra.mxu1 %v210_v10  ;;  %v207_v14 = vld [vmem:[%s1742_s13] sm:$0xff]  ;;  %v246_v15 = vld [vmem:[%s1747_s17 + $0x38] sm:$0xff]  ;;  %v245_v16 = vld [vmem:[%s1747_s17 + $0x30] sm:$0xff]  ;;  %1603 = vrcp.f32 %v1721_v27  ;;  %vm506_vm12 = vcmask 130048   ;;  %s2245_s0 = sld [smem:[#allocation8_spill]]  ;;  %s1441_s2 = sshll.u32 %s1937_s4, 4  ;;  %s1442_s2 = int_to_ptr.hbm [resolvable:$true] %s1441_s2 }
  0x51   :  { %1510 = vmatmul.msk.f32.vlgmr.msra.gmra.mxu0 %vm180_vm0, %v173_v11  ;;  %260 = vmatpush.msra.mxu2 %v246_v15  ;;  %v244_v17 = vld [vmem:[%s1747_s17 + $0x28] sm:$0xff]  ;;  %v243_v18 = vld [vmem:[%s1747_s17 + $0x20] sm:$0xff]  ;;  %v242_v19 = vld [vmem:[%s1747_s17 + $0x18] sm:$0xff]  ;;  %s2246_s5 = sld [smem:[#allocation9_spill]]  ;;  %s1722_s7 = smov [#allocation2]  }
  0x52   :  { %232 = vmatpush.msra.mxu1 %v209_v12  ;;  %300 = vmatpush.msra.mxu3 %v246_v15  ;;  %v241_v20 = vld [vmem:[%s1747_s17 + $0x10] sm:$0xff]  ;;  %v240_v21 = vld [vmem:[%s1747_s17 + $0x8] sm:$0xff]  ;;  %v239_v25 = vld [vmem:[%s1747_s17] sm:$0xff]  ;;  %s2247_s9 = sld [smem:[#allocation12_spill]]  ;;  %s1439_s10 = sshll.u32 %s1722_s7, 4  ;;  %s1440_s10 = int_to_ptr.vmem [resolvable:$true] %s1439_s10 }
  0x53   :  { %261 = vmatpush.msra.mxu2 %v245_v16  ;;  %v350_v45 = vld [vmem:[%s1762_s29 + $0x38] sm:$0xff]  ;;  %v349_v46 = vld [vmem:[%s1762_s29 + $0x30] sm:$0xff]  ;;  %v348_v47 = vld [vmem:[%s1762_s29 + $0x28] sm:$0xff]  ;;  %s2248_s13 = sld [smem:[#allocation13_spill]]  ;;  %s1639_s11 = sshra.s32 %s1442_s2, 4  ;;  %s1640_s11 = int_to_ptr.hbm [resolvable:$true] %s1639_s11 }
  0x54   :  { %233 = vmatpush.msra.mxu1 %v208_v13  ;;  %301 = vmatpush.msra.mxu3 %v245_v16  ;;  %v347_v50 = vld [vmem:[%s1762_s29 + $0x20] sm:$0xff]  ;;  %v346_v52 = vld [vmem:[%s1762_s29 + $0x18] sm:$0xff]  ;;  %v345_v54 = vld [vmem:[%s1762_s29 + $0x10] sm:$0xff]  ;;  %s2249_s17 = sld [smem:[#allocation10_spill]]  ;;  %p1644_p1 = scmp.lt.s32.totalorder %s1640_s11, %s1937_s4 }
  0x55   :  { %262 = vmatpush.msra.mxu2 %v244_v17  ;;  %362 = vmatpush.msrb.mxu0 %v350_v45  ;;  %v344_v56 = vld [vmem:[%s1762_s29 + $0x8] sm:$0xff]  ;;  %v343_v58 = vld [vmem:[%s1762_s29] sm:$0xff]  ;;  %v381_v61 = vld [vmem:[%s1767_s3 + $0x38] sm:$0xff]  ;;  %s2252_s29 = sld [smem:[#allocation17_spill]] }
  0x56   :  { %234 = vmatpush.msra.mxu1 %v207_v14  ;;  %302 = vmatpush.msra.mxu3 %v244_v17  ;;  %v1604_v28 = vpop.eup %1603  ;;  %v380_v62 = vld [vmem:[%s1767_s3 + $0x30] sm:$0xff]  ;;  %v379_v0 = vld [vmem:[%s1767_s3 + $0x28] sm:$0xff]  ;;  %v378_v2 = vld [vmem:[%s1767_s3 + $0x20] sm:$0xff]  ;;  %s2260_s15 = sld [smem:[#allocation23_spill]] }
  0x57   :  { %263 = vmatpush.msra.mxu2 %v243_v18  ;;  %v280_v29 = vmul.f32 8.0, %v1604_v28  ;;  %vm284_vm3 = vweird.f32 %v1604_v28  ;;  %363 = vmatpush.msrb.mxu0 %v349_v46  ;;  %v377_v3 = vld [vmem:[%s1767_s3 + $0x18] sm:$0xff]  ;;  %v376_v4 = vld [vmem:[%s1767_s3 + $0x10] sm:$0xff]  ;;  %v375_v5 = vld [vmem:[%s1767_s3 + $0x8] sm:$0xff]  ;;  %s2262_s16 = sld [smem:[#allocation27_spill]] }
  0x58   :  { %303 = vmatpush.msra.mxu3 %v243_v18  ;;  %395 = vmatpush.msrb.mxu1 %v381_v61  ;;  %v1585_v12 = vld [vmem:[%s1752_s21] ss:$0 sm:$0xff]  ;;  %v472_v45 = vld [vmem:[%s1782_s19 + $0x8] sm:$0xff]  ;;  %s2250_s21 = sld [smem:[#allocation11_spill]] }
  0x59   :  { %264 = vmatpush.msra.mxu2 %v242_v19  ;;  %v281_v30 = vsub.f32 1.0, %v280_v29  ;;  %364 = vmatpush.msrb.mxu0 %v348_v47  ;;  %v1586_v15 = vld [vmem:[%s1757_s25] ss:$0 sm:$0xff]  ;;  %s2251_s25 = sld [smem:[#allocation16_spill]] }
  0x5a   :  { %304 = vmatpush.msra.mxu3 %v242_v19  ;;  %396 = vmatpush.msrb.mxu1 %v380_v62  ;;  %v471_v47 = vld [vmem:[%s1782_s19] sm:$0xff]  ;;  %s2263_s18 = sld [smem:[#allocation24_spill]] }
  0x5b   :  { %265 = vmatpush.msra.mxu2 %v241_v20  ;;  %v282_v34 = vmul.f32 %v1604_v28, %v281_v30  ;;  %365 = vmatpush.msrb.mxu0 %v347_v50  ;;  %v503_v50 = vld [vmem:[%s1787_s24 + $0x8] sm:$0xff]  ;;  %s2264_s22 = sld [smem:[#allocation25_spill]] }
  0x5c   :  { %305 = vmatpush.msra.mxu3 %v241_v20  ;;  %397 = vmatpush.msrb.mxu1 %v379_v0  ;;  %v374_v20 = vld [vmem:[%s1767_s3] sm:$0xff]  ;;  %s2253_s3 = sld [smem:[#allocation14_spill]] }
  0x5d   :  { %266 = vmatpush.msra.mxu2 %v240_v21  ;;  %v283_v37 = vadd.f32 %v1604_v28, %v282_v34  ;;  %366 = vmatpush.msrb.mxu0 %v346_v52  ;;  %v477_v34 = vld [vmem:[%s1782_s19 + $0x30] sm:$0xff]  ;;  %s2265_s23 = sld [smem:[#allocation30_spill]] }
  0x5e   :  { %306 = vmatpush.msra.mxu3 %v240_v21  ;;  %398 = vmatpush.msrb.mxu1 %v378_v2  ;;  %s2266_s26 = sld [smem:[#allocation31_spill]] }
  0x5f   :  { %267 = vmatpush.msra.mxu2 %v239_v25  ;;  %v1971_v40 = vsel %vm284_vm3, %v1604_v28, %v283_v37  ;;  %367 = vmatpush.msrb.mxu0 %v345_v54  ;;  %s2267_s28 = sld [smem:[#allocation28_spill]] }
  0x60   :  { %307 = vmatpush.msra.mxu3 %v239_v25  ;;  %399 = vmatpush.msrb.mxu1 %v377_v3  ;;  %s2268_s1 = sld [smem:[#allocation29_spill]] }
  0x61   :  { %368 = vmatpush.msrb.mxu0 %v344_v56  ;;  %428 = vmatpush.msrb.mxu2 %v381_v61 }
  0x62   :  { %400 = vmatpush.msrb.mxu1 %v376_v4 }
  0x63   :  { %369 = vmatpush.msrb.mxu0 %v343_v58  ;;  %429 = vmatpush.msrb.mxu2 %v380_v62 }
  0x64   :  { %401 = vmatpush.msrb.mxu1 %v375_v5 }
  0x65   :  { %430 = vmatpush.msrb.mxu2 %v379_v0  ;;  %524 = vmatpush.msra.mxu0 %v503_v50 }
  0x66   :  { %402 = vmatpush.msrb.mxu1 %v374_v20 }
  0x67   :  { %431 = vmatpush.msrb.mxu2 %v378_v2 }
  0x69   :  { %432 = vmatpush.msrb.mxu2 %v377_v3 }
  0x6b   :  { %433 = vmatpush.msrb.mxu2 %v376_v4 }
  0x6d   :  { %434 = vmatpush.msrb.mxu2 %v375_v5 }
  0x6f   :  { %435 = vmatpush.msrb.mxu2 %v374_v20 }
  0xce   :  { %v201_v22 = vpop.f32.mrf.mxu0 }
  0xcf   :  { %vm204_vm1 = vcmp.ge.f32.partialorder %v201_v22, 0.0  ;;  %v205_v23 = vmul.f32 0.2, %v201_v22 }
  0xd1   :  { %v206_v24 = vsel %vm204_vm1, %v201_v22, %v205_v23 }
  0xd2   :  { %1511 = vmatmul.msk.f32.vlgmr.msra.gmra.mxu1 %vm215_vm2, %v206_v24 }
  0xd3   :  { %557 = vmatpush.msra.mxu1 %v503_v50  ;;  %v620_v50 = vld [vmem:[%s1807_s20] sm:$0xff] }
 0x14f   :  { %v236_v26 = vpop.f32.mrf.mxu1 }
 0x150   :  { %1512 = vmatmul.msk.f32.vlgmr.msra.gmra.mxu2 %vm215_vm2, %v236_v26 }
 0x1d3   :  { %v269_v31 = vpop.f32.mrf.mxu2 }
 0x1d4   :  { %v272_v32 = vsel %vm215_vm2, %v269_v31, 0.0 }
 0x1d5   :  { %v273_v33 = vrot.slane %v272_v32, 4 }
 0x1d7   :  { %v274_v35 = vadd.f32 %v273_v33, %v272_v32  ;;  %v478_v33 = vld [vmem:[%s1782_s19 + $0x38] sm:$0xff] }
 0x1d8   :  { %490 = vmatpush.msrb.mxu3 %v478_v33  ;;  %v622_v33 = vld [vmem:[%s1807_s20 + $0x10] sm:$0xff] }
 0x1d9   :  { %v275_v36 = vrot.slane %v274_v35, 2 }
 0x1da   :  { %491 = vmatpush.msrb.mxu3 %v477_v34  ;;  %v621_v34 = vld [vmem:[%s1807_s20 + $0x8] sm:$0xff] }
 0x1db   :  { %v276_v38 = vadd.f32 %v275_v36, %v274_v35  ;;  %v476_v35 = vld [vmem:[%s1782_s19 + $0x28] sm:$0xff] }
 0x1dc   :  { %492 = vmatpush.msrb.mxu3 %v476_v35 }
 0x1dd   :  { %v277_v39 = vrot.slane %v276_v38, 1 }
 0x1df   :  { %v278_v41 = vadd.f32 %v277_v39, %v276_v38  ;;  %v475_v38 = vld [vmem:[%s1782_s19 + $0x20] sm:$0xff] }
 0x1e0   :  { %493 = vmatpush.msrb.mxu3 %v475_v38 }
 0x1e1   :  { %v286_v42 = vmul.f32 %v1971_v40, %v278_v41  ;;  %v474_v41 = vld [vmem:[%s1782_s19 + $0x18] sm:$0xff] }
 0x1e2   :  { %494 = vmatpush.msrb.mxu3 %v474_v41 }
 0x1e3   :  { %v1974_v43 = vsub.f32 %v236_v26, %v286_v42 }
 0x1e5   :  { %v288_v44 = vmul.f32 %v1974_v43, %v1974_v43 }
 0x1e7   :  { %1513 = vmatmul.msk.f32.vlgmr.msra.gmra.mxu3 %vm215_vm2, %v288_v44 }
 0x26a   :  { %v309_v48 = vpop.f32.mrf.mxu3 }
 0x26b   :  { %v312_v49 = vsel %vm215_vm2, %v309_v48, 0.0 }
 0x26c   :  { %v313_v51 = vrot.slane %v312_v49, 4 }
 0x26e   :  { %v314_v53 = vadd.f32 %v313_v51, %v312_v49  ;;  %v502_v51 = vld [vmem:[%s1787_s24] sm:$0xff]  ;;  %s2257_s24 = sld [smem:[#allocation19_spill]] }
 0x26f   :  { %525 = vmatpush.msra.mxu0 %v502_v51  ;;  %558 = vmatpush.msra.mxu1 %v502_v51 }
 0x270   :  { %v315_v55 = vrot.slane %v314_v53, 2 }
 0x272   :  { %v316_v57 = vadd.f32 %v315_v55, %v314_v53 }
 0x274   :  { %v317_v59 = vrot.slane %v316_v57, 1 }
 0x276   :  { %v318_v60 = vadd.f32 %v317_v59, %v316_v57 }
 0x278   :  { %v319_v63 = vmul.f32 %v318_v60, %v1971_v40  ;;  %v1587_v60 = vld [vmem:[%s1772_s8] ss:$0 sm:$0xff]  ;;  %s2254_s8 = sld [smem:[#allocation15_spill]] }
 0x27a   :  { %v320_v1 = vadd.f32 1e-05, %v319_v63  ;;  %v1588_v63 = vld [vmem:[%s1777_s14] ss:$0 sm:$0xff]  ;;  %s2255_s14 = sld [smem:[#allocation20_spill]] }
 0x27c   :  { %1605 = vrsqrt.f32 %v320_v1  ;;  %vm327_vm5 = vweird.f32 %v320_v1 }
 0x282   :  { %v1606_v6 = vpop.eup %1605 }
 0x283   :  { %v322_v7 = vmul.f32 %v1606_v6, %v320_v1  ;;  %vm328_vm4 = vweird.f32 %v1606_v6 }
 0x284   :  { %vm329_vm6 = vmor %vm327_vm5, %vm328_vm4 }
 0x285   :  { %v323_v8 = vmul.f32 %v1606_v6, %v322_v7 }
 0x287   :  { %v324_v9 = vmul.f32 0.5, %v323_v8 }
 0x289   :  { %v325_v10 = vsub.f32 1.5, %v324_v9 }
 0x28b   :  { %v326_v11 = vmul.f32 %v1606_v6, %v325_v10 }
 0x28d   :  { %v330_v13 = vsel %vm329_vm6, %v1606_v6, %v326_v11 }
 0x28e   :  { %v331_v14 = vmul.f32 %v330_v13, %v1974_v43  ;;  %v473_v43 = vld [vmem:[%s1782_s19 + $0x10] sm:$0xff]  ;;  %s2256_s19 = sld [smem:[#allocation18_spill]] }
 0x28f   :  { %495 = vmatpush.msrb.mxu3 %v473_v43 }
 0x290   :  { %v335_v16 = vmul.f32 %v1585_v12, %v331_v14 }
 0x291   :  { %496 = vmatpush.msrb.mxu3 %v472_v45  ;;  %v1590_v45 = vld [vmem:[%s2246_s5] ss:$0 sm:$0xff]  ;;  %s1643_s5 = scalar_lea.hbm %s1937_s4, 8 }
 0x292   :  { %v339_v17 = vadd.f32 %v1586_v15, %v335_v16 }
 0x293   :  { %497 = vmatpush.msrb.mxu3 %v471_v47 }
 0x294   :  { %vm340_vm7 = vcmp.ge.f32.partialorder %v339_v17, 0.0  ;;  %v341_v18 = vmul.f32 0.2, %v339_v17 }
 0x296   :  { %v342_v19 = vsel %vm340_vm7, %v339_v17, %v341_v18  ;;  %v596_v18 = vld [vmem:[%s1802_s12 + $0x8] sm:$0xff] }
 0x297   :  { %1514 = vmatmul.msk.f32.vlgmr.msrb.gmra.mxu0 %vm215_vm2, %v342_v19  ;;  %v595_v19 = vld [vmem:[%s1802_s12] sm:$0xff]  ;;  %614 = vmatpush.msra.mxu2 %v596_v18  ;;  %v751_v18 = vld [vmem:[%s2248_s13 + $0x28] sm:$0xff]  ;;  %s2258_s12 = sld [smem:[#allocation21_spill]] }
 0x299   :  { %615 = vmatpush.msra.mxu2 %v595_v19 }
 0x314   :  { %v371_v21 = vpop.f32.mrf.mxu0 }
 0x315   :  { %1515 = vmatmul.msk.f32.vlgmr.msrb.gmra.mxu1 %vm215_vm2, %v371_v21 }
 0x392   :  { %v404_v22 = vpop.f32.mrf.mxu1 }
 0x393   :  { %v407_v23 = vsel %vm215_vm2, %v404_v22, 0.0 }
 0x394   :  { %v408_v24 = vrot.slane %v407_v23, 4 }
 0x396   :  { %v409_v25 = vadd.f32 %v408_v24, %v407_v23 }
 0x398   :  { %v410_v26 = vrot.slane %v409_v25, 2 }
 0x39a   :  { %v411_v27 = vadd.f32 %v410_v26, %v409_v25  ;;  %v627_v26 = vld [vmem:[%s1807_s20 + $0x38] sm:$0xff] }
 0x39b   :  { %641 = vmatpush.msra.mxu3 %v627_v26  ;;  %674 = vmatpush.msrb.mxu0 %v627_v26 }
 0x39c   :  { %v412_v28 = vrot.slane %v411_v27, 1 }
 0x39e   :  { %v413_v29 = vadd.f32 %v412_v28, %v411_v27  ;;  %v626_v27 = vld [vmem:[%s1807_s20 + $0x30] sm:$0xff] }
 0x39f   :  { %642 = vmatpush.msra.mxu3 %v626_v27  ;;  %675 = vmatpush.msrb.mxu0 %v626_v27 }
 0x3a0   :  { %v414_v30 = vmul.f32 %v413_v29, %v1971_v40  ;;  %v625_v29 = vld [vmem:[%s1807_s20 + $0x28] sm:$0xff] }
 0x3a1   :  { %643 = vmatpush.msra.mxu3 %v625_v29  ;;  %676 = vmatpush.msrb.mxu0 %v625_v29 }
 0x3a2   :  { %v415_v31 = vsub.f32 %v371_v21, %v414_v30 }
 0x3a4   :  { %v416_v32 = vmul.f32 %v415_v31, %v415_v31 }
 0x3a6   :  { %1516 = vmatmul.msk.f32.vlgmr.msrb.gmra.mxu2 %vm215_vm2, %v416_v32  ;;  %v623_v32 = vld [vmem:[%s1807_s20 + $0x18] sm:$0xff] }
 0x429   :  { %v437_v36 = vpop.f32.mrf.mxu2 }
 0x42a   :  { %v440_v37 = vsel %vm215_vm2, %v437_v36, 0.0 }
 0x42b   :  { %v441_v39 = vrot.slane %v440_v37, 4 }
 0x42d   :  { %v442_v42 = vadd.f32 %v441_v39, %v440_v37 }
 0x42f   :  { %v443_v44 = vrot.slane %v442_v42, 2 }
 0x431   :  { %v444_v46 = vadd.f32 %v443_v44, %v442_v42  ;;  %v1589_v42 = vld [vmem:[%s2245_s0] ss:$0 sm:$0xff]  ;;  %s1641_s0 = scalar_lea.hbm %s1640_s11, 8 }
 0x432   :  { %p1642_p0 = scmp.ne.s32.totalorder %s1640_s11, %s1641_s0  ;;  %p1645_p2 = scmp.lt.s32.totalorder %s1643_s5, %s1641_s0 }
 0x433   :  { %v445_v48 = vrot.slane %v444_v46, 1 }
 0x434   :  { %p1646_p3 = por %p1645_p2, %p1644_p1 }
 0x435   :  { %v446_v49 = vadd.f32 %v445_v48, %v444_v46 }
 0x436   :  { %p1647_p4 = pnand %p1646_p3, %p1642_p0 }
 0x437   :  { %v447_v52 = vmul.f32 %v446_v49, %v1971_v40 }
 0x439   :  { %v448_v53 = vadd.f32 1e-05, %v447_v52 }
 0x43b   :  { %1607 = vrsqrt.f32 %v448_v53  ;;  %vm455_vm9 = vweird.f32 %v448_v53 }
 0x441   :  { %v1608_v54 = vpop.eup %1607 }
 0x442   :  { %v450_v55 = vmul.f32 %v1608_v54, %v448_v53  ;;  %vm456_vm8 = vweird.f32 %v1608_v54 }
 0x443   :  { %vm457_vm10 = vmor %vm455_vm9, %vm456_vm8 }
 0x444   :  { %v451_v56 = vmul.f32 %v1608_v54, %v450_v55 }
 0x446   :  { %v452_v57 = vmul.f32 0.5, %v451_v56 }
 0x448   :  { %v453_v58 = vsub.f32 1.5, %v452_v57 }
 0x44a   :  { %v454_v59 = vmul.f32 %v1608_v54, %v453_v58 }
 0x44c   :  { %v458_v61 = vsel %vm457_vm10, %v1608_v54, %v454_v59 }
 0x44d   :  { %v459_v62 = vmul.f32 %v458_v61, %v415_v31  ;;  %v624_v31 = vld [vmem:[%s1807_s20 + $0x20] sm:$0xff]  ;;  %s2259_s20 = sld [smem:[#allocation22_spill]] }
 0x44e   :  { %644 = vmatpush.msra.mxu3 %v624_v31  ;;  %677 = vmatpush.msrb.mxu0 %v624_v31 }
 0x44f   :  { %v463_v0 = vmul.f32 %v1587_v60, %v459_v62 }
 0x450   :  { %645 = vmatpush.msra.mxu3 %v623_v32  ;;  %678 = vmatpush.msrb.mxu0 %v623_v32 }
 0x451   :  { %v467_v1 = vadd.f32 %v1588_v63, %v463_v0  ;;  %v722_v63 = vld [vmem:[%s2247_s9 + $0x38] sm:$0xff]  ;;  %v721_v0 = vld [vmem:[%s2247_s9 + $0x30] sm:$0xff] }
 0x452   :  { %646 = vmatpush.msra.mxu3 %v622_v33  ;;  %679 = vmatpush.msrb.mxu0 %v622_v33  ;;  %v1592_v33 = vld [vmem:[%s2250_s21] ss:$0 sm:$0xff] }
 0x453   :  { %vm468_vm11 = vcmp.ge.f32.partialorder %v467_v1, 0.0  ;;  %v469_v2 = vmul.f32 0.2, %v467_v1  ;;  %734 = vmatpush.msrb.mxu1 %v722_v63 }
 0x454   :  { %647 = vmatpush.msra.mxu3 %v621_v34  ;;  %680 = vmatpush.msrb.mxu0 %v621_v34 }
 0x455   :  { %v470_v3 = vsel %vm468_vm11, %v467_v1, %v469_v2  ;;  %735 = vmatpush.msrb.mxu1 %v721_v0  ;;  %v720_v2 = vld [vmem:[%s2247_s9 + $0x28] sm:$0xff]  ;;  %v841_v0 = vld [vmem:[%s2251_s25] sm:$0xff] }
 0x456   :  { %1517 = vmatmul.msk.f32.vlgmr.msrb.gmra.mxu3 %vm215_vm2, %v470_v3  ;;  %681 = vmatpush.msrb.mxu0 %v620_v50 }
 0x457   :  { %648 = vmatpush.msra.mxu3 %v620_v50  ;;  %736 = vmatpush.msrb.mxu1 %v720_v2 }
 0x4d9   :  { %v499_v4 = vpop.f32.mrf.mxu3 }
 0x4da   :  { %1518 = vmatmul.msk.f32.vlgmr.msra.gmra.mxu0 %vm506_vm12, %v499_v4 }
 0x557   :  { %v527_v5 = vpop.f32.mrf.mxu0 }
 0x558   :  { %v530_v6 = vsel %vm506_vm12, %v527_v5, 0.0  ;;  %v719_v5 = vld [vmem:[%s2247_s9 + $0x20] sm:$0xff] }
 0x559   :  { %v531_v7 = vrot.slane %v530_v6, 4  ;;  %737 = vmatpush.msrb.mxu1 %v719_v5 }
 0x55b   :  { %v532_v8 = vadd.f32 %v531_v7, %v530_v6  ;;  %v718_v6 = vld [vmem:[%s2247_s9 + $0x18] sm:$0xff] }
 0x55c   :  { %738 = vmatpush.msrb.mxu1 %v718_v6  ;;  %v877_v6 = vld [vmem:[%s2252_s29 + $0x28] sm:$0xff] }
 0x55d   :  { %v533_v9 = vrot.slane %v532_v8, 2 }
 0x55f   :  { %v534_v10 = vadd.f32 %v533_v9, %v532_v8  ;;  %v717_v8 = vld [vmem:[%s2247_s9 + $0x10] sm:$0xff] }
 0x560   :  { %739 = vmatpush.msrb.mxu1 %v717_v8  ;;  %v876_v8 = vld [vmem:[%s2252_s29 + $0x20] sm:$0xff] }
 0x561   :  { %v535_v11 = vrot.slane %v534_v10, 1 }
 0x563   :  { %v536_v12 = vadd.f32 %v535_v11, %v534_v10  ;;  %v716_v10 = vld [vmem:[%s2247_s9 + $0x8] sm:$0xff] }
 0x564   :  { %740 = vmatpush.msrb.mxu1 %v716_v10  ;;  %v874_v10 = vld [vmem:[%s2252_s29 + $0x10] sm:$0xff] }
 0x565   :  { %v537_v13 = vmul.f32 %v536_v12, %v1971_v40  ;;  %v715_v12 = vld [vmem:[%s2247_s9] sm:$0xff] }
 0x566   :  { %741 = vmatpush.msrb.mxu1 %v715_v12 }
 0x567   :  { %v538_v14 = vsub.f32 %v499_v4, %v537_v13 }
 0x569   :  { %v539_v15 = vmul.f32 %v538_v14, %v538_v14 }
 0x56b   :  { %1519 = vmatmul.msk.f32.vlgmr.msra.gmra.mxu1 %vm506_vm12, %v539_v15  ;;  %v753_v15 = vld [vmem:[%s2248_s13 + $0x38] sm:$0xff] }
 0x56c   :  { %767 = vmatpush.msrb.mxu2 %v753_v15  ;;  %800 = vmatpush.msrb.mxu3 %v753_v15 }
 0x5e8   :  { %v560_v16 = vpop.f32.mrf.mxu1 }
 0x5e9   :  { %v563_v17 = vsel %vm506_vm12, %v560_v16, 0.0  ;;  %v752_v16 = vld [vmem:[%s2248_s13 + $0x30] sm:$0xff] }
 0x5ea   :  { %v564_v20 = vrot.slane %v563_v17, 4  ;;  %768 = vmatpush.msrb.mxu2 %v752_v16  ;;  %801 = vmatpush.msrb.mxu3 %v752_v16 }
 0x5ec   :  { %v565_v21 = vadd.f32 %v564_v20, %v563_v17  ;;  %v750_v20 = vld [vmem:[%s2248_s13 + $0x20] sm:$0xff]  ;;  %769 = vmatpush.msrb.mxu2 %v751_v18  ;;  %802 = vmatpush.msrb.mxu3 %v751_v18 }
 0x5ed   :  { %v1593_v18 = vld [vmem:[%s2253_s3] ss:$0 sm:$0xff] }
 0x5ee   :  { %v566_v22 = vrot.slane %v565_v21, 2  ;;  %770 = vmatpush.msrb.mxu2 %v750_v20  ;;  %803 = vmatpush.msrb.mxu3 %v750_v20 }
 0x5f0   :  { %v567_v23 = vadd.f32 %v566_v22, %v565_v21  ;;  %v749_v21 = vld [vmem:[%s2248_s13 + $0x18] sm:$0xff]  ;;  %v748_v22 = vld [vmem:[%s2248_s13 + $0x10] sm:$0xff] }
 0x5f1   :  { %771 = vmatpush.msrb.mxu2 %v749_v21  ;;  %804 = vmatpush.msrb.mxu3 %v749_v21  ;;  %v1594_v21 = vld [vmem:[%s2254_s8] ss:$0 sm:$0xff] }
 0x5f2   :  { %v568_v24 = vrot.slane %v567_v23, 1 }
 0x5f3   :  { %772 = vmatpush.msrb.mxu2 %v748_v22  ;;  %805 = vmatpush.msrb.mxu3 %v748_v22 }
 0x5f4   :  { %v569_v25 = vadd.f32 %v568_v24, %v567_v23  ;;  %v747_v23 = vld [vmem:[%s2248_s13 + $0x8] sm:$0xff] }
 0x5f5   :  { %773 = vmatpush.msrb.mxu2 %v747_v23  ;;  %806 = vmatpush.msrb.mxu3 %v747_v23 }
 0x5f6   :  { %v570_v28 = vmul.f32 %v569_v25, %v1971_v40 }
 0x5f8   :  { %v571_v30 = vadd.f32 1e-05, %v570_v28 }
 0x5fa   :  { %1609 = vrsqrt.f32 %v571_v30  ;;  %vm578_vm14 = vweird.f32 %v571_v30 }
 0x600   :  { %v1610_v35 = vpop.eup %1609 }
 0x601   :  { %v573_v36 = vmul.f32 %v1610_v35, %v571_v30  ;;  %vm579_vm13 = vweird.f32 %v1610_v35  ;;  %v1591_v30 = vld [vmem:[%s2249_s17] ss:$0 sm:$0xff] }
 0x602   :  { %vm580_vm15 = vmor %vm578_vm14, %vm579_vm13 }
 0x603   :  { %v574_v37 = vmul.f32 %v1610_v35, %v573_v36 }
 0x605   :  { %v575_v38 = vmul.f32 0.5, %v574_v37  ;;  %v746_v37 = vld [vmem:[%s2248_s13] sm:$0xff] }
 0x606   :  { %774 = vmatpush.msrb.mxu2 %v746_v37  ;;  %807 = vmatpush.msrb.mxu3 %v746_v37 }
 0x607   :  { %v576_v39 = vsub.f32 1.5, %v575_v38 }
 0x609   :  { %v577_v41 = vmul.f32 %v1610_v35, %v576_v39 }
 0x60b   :  { %v581_v43 = vsel %vm580_vm15, %v1610_v35, %v577_v41 }
 0x60c   :  { %v582_v44 = vmul.f32 %v581_v43, %v538_v14 }
 0x60e   :  { %v586_v46 = vmul.f32 %v1589_v42, %v582_v44 }
 0x610   :  { %v590_v47 = vadd.f32 %v1590_v45, %v586_v46 }
 0x612   :  { %vm591_vm1 = vcmp.ge.f32.partialorder %v590_v47, 0.0  ;;  %v592_v48 = vmul.f32 0.2, %v590_v47 }
 0x614   :  { %v593_v49 = vsel %vm591_vm1, %v590_v47, %v592_v48 }
 0x615   :  { %1520 = vmatmul.msk.f32.vlgmr.msra.gmra.mxu2 %vm506_vm12, %v593_v49  ;;  %594 = vst.msk [vmem:[#allocation2] sm:$0xff] %vm506_vm12, %v593_v49 }
 0x698   :  { %v617_v51 = vpop.f32.mrf.mxu2 }
 0x699   :  { %1521 = vmatmul.msk.f32.vlgmr.msra.gmra.mxu3 %vm215_vm2, %v617_v51 }
 0x71c   :  { %v650_v52 = vpop.f32.mrf.mxu3 }
 0x71d   :  { %v653_v53 = vsel %vm215_vm2, %v650_v52, 0.0  ;;  %v847_v52 = vld [vmem:[%s2251_s25 + $0x30] sm:$0xff] }
 0x71e   :  { %v654_v54 = vrot.slane %v653_v53, 4 }
 0x720   :  { %v655_v55 = vadd.f32 %v654_v54, %v653_v53  ;;  %v846_v54 = vld [vmem:[%s2251_s25 + $0x28] sm:$0xff] }
 0x722   :  { %v656_v56 = vrot.slane %v655_v55, 2 }
 0x724   :  { %v657_v57 = vadd.f32 %v656_v56, %v655_v55 }
 0x726   :  { %v658_v58 = vrot.slane %v657_v57, 1 }
 0x728   :  { %v659_v59 = vadd.f32 %v658_v58, %v657_v57  ;;  %v845_v57 = vld [vmem:[%s2251_s25 + $0x20] sm:$0xff]  ;;  %v844_v58 = vld [vmem:[%s2251_s25 + $0x18] sm:$0xff] }
 0x72a   :  { %v660_v60 = vmul.f32 %v659_v59, %v1971_v40 }
 0x72c   :  { %v2043_v61 = vsub.f32 %v617_v51, %v660_v60  ;;  %v848_v51 = vld [vmem:[%s2251_s25 + $0x38] sm:$0xff]  ;;  %v843_v60 = vld [vmem:[%s2251_s25 + $0x10] sm:$0xff] }
 0x72d   :  { %860 = vmatpush.msra.mxu0 %v848_v51 }
 0x72e   :  { %v662_v62 = vmul.f32 %v2043_v61, %v2043_v61 }
 0x72f   :  { %861 = vmatpush.msra.mxu0 %v847_v52  ;;  %v967_v52 = vld [vmem:[%s2255_s14] sm:$0xff] }
 0x730   :  { %1522 = vmatmul.msk.f32.vlgmr.msrb.gmra.mxu0 %vm215_vm2, %v662_v62  ;;  %v842_v62 = vld [vmem:[%s2251_s25 + $0x8] sm:$0xff] }
 0x731   :  { %862 = vmatpush.msra.mxu0 %v846_v54 }
 0x733   :  { %863 = vmatpush.msra.mxu0 %v845_v57 }
 0x735   :  { %864 = vmatpush.msra.mxu0 %v844_v58 }
 0x737   :  { %865 = vmatpush.msra.mxu0 %v843_v60 }
 0x739   :  { %866 = vmatpush.msra.mxu0 %v842_v62 }
 0x73b   :  { %867 = vmatpush.msra.mxu0 %v841_v0 }
 0x7ad   :  { %v683_v1 = vpop.f32.mrf.mxu0 }
 0x7ae   :  { %v686_v3 = vsel %vm215_vm2, %v683_v1, 0.0 }
 0x7af   :  { %v687_v4 = vrot.slane %v686_v3, 4 }
 0x7b1   :  { %v688_v7 = vadd.f32 %v687_v4, %v686_v3  ;;  %v879_v3 = vld [vmem:[%s2252_s29 + $0x38] sm:$0xff]  ;;  %v878_v4 = vld [vmem:[%s2252_s29 + $0x30] sm:$0xff] }
 0x7b2   :  { %893 = vmatpush.msra.mxu1 %v879_v3  ;;  %926 = vmatpush.msra.mxu2 %v879_v3 }
 0x7b3   :  { %v689_v9 = vrot.slane %v688_v7, 2 }
 0x7b4   :  { %894 = vmatpush.msra.mxu1 %v878_v4  ;;  %927 = vmatpush.msra.mxu2 %v878_v4 }
 0x7b5   :  { %v690_v11 = vadd.f32 %v689_v9, %v688_v7  ;;  %v875_v9 = vld [vmem:[%s2252_s29 + $0x18] sm:$0xff] }
 0x7b6   :  { %895 = vmatpush.msra.mxu1 %v877_v6  ;;  %928 = vmatpush.msra.mxu2 %v877_v6  ;;  %v1026_v6 = vld [vmem:[%s2258_s12 + $0x28] sm:$0xff] }
 0x7b7   :  { %v691_v13 = vrot.slane %v690_v11, 1  ;;  %1040 = vmatpush.msrb.mxu0 %v1026_v6 }
 0x7b8   :  { %896 = vmatpush.msra.mxu1 %v876_v8  ;;  %929 = vmatpush.msra.mxu2 %v876_v8  ;;  %v1024_v8 = vld [vmem:[%s2258_s12 + $0x18] sm:$0xff] }
 0x7b9   :  { %v692_v14 = vadd.f32 %v691_v13, %v690_v11  ;;  %v873_v11 = vld [vmem:[%s2252_s29 + $0x8] sm:$0xff] }
 0x7ba   :  { %897 = vmatpush.msra.mxu1 %v875_v9  ;;  %930 = vmatpush.msra.mxu2 %v875_v9  ;;  %v1023_v9 = vld [vmem:[%s2258_s12 + $0x10] sm:$0xff] }
 0x7bb   :  { %v693_v17 = vmul.f32 %v692_v14, %v1971_v40 }
 0x7bc   :  { %898 = vmatpush.msra.mxu1 %v874_v10  ;;  %931 = vmatpush.msra.mxu2 %v874_v10 }
 0x7bd   :  { %v694_v19 = vadd.f32 1e-05, %v693_v17 }
 0x7be   :  { %899 = vmatpush.msra.mxu1 %v873_v11  ;;  %932 = vmatpush.msra.mxu2 %v873_v11  ;;  %v1022_v11 = vld [vmem:[%s2258_s12 + $0x8] sm:$0xff] }
 0x7bf   :  { %1611 = vrsqrt.f32 %v694_v19  ;;  %vm701_vm4 = vweird.f32 %v694_v19 }
 0x7c5   :  { %v1612_v24 = vpop.eup %1611 }
 0x7c6   :  { %v696_v25 = vmul.f32 %v1612_v24, %v694_v19  ;;  %vm702_vm3 = vweird.f32 %v1612_v24 }
 0x7c7   :  { %vm703_vm5 = vmor %vm701_vm4, %vm702_vm3 }
 0x7c8   :  { %v697_v26 = vmul.f32 %v1612_v24, %v696_v25  ;;  %v872_v25 = vld [vmem:[%s2252_s29] sm:$0xff] }
 0x7c9   :  { %900 = vmatpush.msra.mxu1 %v872_v25  ;;  %933 = vmatpush.msra.mxu2 %v872_v25 }
 0x7ca   :  { %v698_v27 = vmul.f32 0.5, %v697_v26 }
 0x7cc   :  { %v699_v28 = vsub.f32 1.5, %v698_v27 }
 0x7ce   :  { %v700_v29 = vmul.f32 %v1612_v24, %v699_v28 }
 0x7d0   :  { %v704_v31 = vsel %vm703_vm5, %v1612_v24, %v700_v29 }
 0x7d1   :  { %v705_v32 = vmul.f32 %v704_v31, %v2043_v61 }
 0x7d3   :  { %v709_v34 = vmul.f32 %v1591_v30, %v705_v32 }
 0x7d5   :  { %v713_v35 = vadd.f32 %v1592_v33, %v709_v34 }
 0x7d7   :  { %v714_v36 = vmax.f32 %v713_v35, 0.0 }
 0x7d9   :  { %1523 = vmatmul.msk.f32.vlgmr.msrb.gmra.mxu1 %vm215_vm2, %v714_v36 }
 0x856   :  { %v743_v38 = vpop.f32.mrf.mxu1 }
 0x857   :  { %1524 = vmatmul.msk.f32.vlgmr.msrb.gmra.mxu2 %vm215_vm2, %v743_v38 }
 0x8da   :  { %v776_v39 = vpop.f32.mrf.mxu2 }
 0x8db   :  { %v779_v41 = vsel %vm215_vm2, %v776_v39, 0.0  ;;  %v973_v39 = vld [vmem:[%s2255_s14 + $0x30] sm:$0xff] }
 0x8dc   :  { %v780_v42 = vrot.slane %v779_v41, 4 }
 0x8de   :  { %v781_v43 = vadd.f32 %v780_v42, %v779_v41  ;;  %v972_v42 = vld [vmem:[%s2255_s14 + $0x28] sm:$0xff] }
 0x8e0   :  { %v782_v44 = vrot.slane %v781_v43, 2 }
 0x8e2   :  { %v783_v45 = vadd.f32 %v782_v44, %v781_v43 }
 0x8e4   :  { %v784_v46 = vrot.slane %v783_v45, 1 }
 0x8e6   :  { %v785_v47 = vadd.f32 %v784_v46, %v783_v45  ;;  %v971_v45 = vld [vmem:[%s2255_s14 + $0x20] sm:$0xff]  ;;  %v970_v46 = vld [vmem:[%s2255_s14 + $0x18] sm:$0xff] }
 0x8e8   :  { %v786_v48 = vmul.f32 %v785_v47, %v1971_v40 }
 0x8ea   :  { %v2073_v49 = vsub.f32 %v743_v38, %v786_v48  ;;  %v974_v38 = vld [vmem:[%s2255_s14 + $0x38] sm:$0xff]  ;;  %v969_v48 = vld [vmem:[%s2255_s14 + $0x10] sm:$0xff] }
 0x8eb   :  { %986 = vmatpush.msra.mxu3 %v974_v38  ;;  %v1091_v38 = vld [vmem:[%s2260_s15 + $0x38] sm:$0xff] }
 0x8ec   :  { %v788_v50 = vmul.f32 %v2073_v49, %v2073_v49  ;;  %1105 = vmatpush.msrb.mxu2 %v1091_v38 }
 0x8ed   :  { %987 = vmatpush.msra.mxu3 %v973_v39  ;;  %v1090_v39 = vld [vmem:[%s2260_s15 + $0x30] sm:$0xff] }
 0x8ee   :  { %1525 = vmatmul.msk.f32.vlgmr.msrb.gmra.mxu3 %vm215_vm2, %v788_v50  ;;  %v968_v50 = vld [vmem:[%s2255_s14 + $0x8] sm:$0xff]  ;;  %1106 = vmatpush.msrb.mxu2 %v1090_v39 }
 0x8ef   :  { %988 = vmatpush.msra.mxu3 %v972_v42  ;;  %v1088_v42 = vld [vmem:[%s2260_s15 + $0x20] sm:$0xff] }
 0x8f1   :  { %989 = vmatpush.msra.mxu3 %v971_v45  ;;  %v1085_v45 = vld [vmem:[%s2260_s15 + $0x8] sm:$0xff] }
 0x8f3   :  { %990 = vmatpush.msra.mxu3 %v970_v46 }
 0x8f5   :  { %991 = vmatpush.msra.mxu3 %v969_v48 }
 0x8f7   :  { %992 = vmatpush.msra.mxu3 %v968_v50 }
 0x8f9   :  { %993 = vmatpush.msra.mxu3 %v967_v52 }
 0x971   :  { %v809_v53 = vpop.f32.mrf.mxu3 }
 0x972   :  { %v812_v55 = vsel %vm215_vm2, %v809_v53, 0.0 }
 0x973   :  { %v813_v56 = vrot.slane %v812_v55, 4 }
 0x975   :  { %v814_v59 = vadd.f32 %v813_v56, %v812_v55 }
 0x977   :  { %v815_v61 = vrot.slane %v814_v59, 2 }
 0x979   :  { %v816_v63 = vadd.f32 %v815_v61, %v814_v59 }
 0x97b   :  { %v817_v1 = vrot.slane %v816_v63, 1 }
 0x97d   :  { %v818_v2 = vadd.f32 %v817_v1, %v816_v63  ;;  %v1595_v63 = vld [vmem:[%s2256_s19] ss:$0 sm:$0xff] }
 0x97f   :  { %v819_v5 = vmul.f32 %v818_v2, %v1971_v40  ;;  %v1596_v2 = vld [vmem:[%s2257_s24] ss:$0 sm:$0xff] }
 0x981   :  { %v820_v7 = vadd.f32 1e-05, %v819_v5 }
 0x983   :  { %1613 = vrsqrt.f32 %v820_v7  ;;  %vm827_vm7 = vweird.f32 %v820_v7 }
 0x989   :  { %v1614_v12 = vpop.eup %1613 }
 0x98a   :  { %v822_v13 = vmul.f32 %v1614_v12, %v820_v7  ;;  %vm828_vm6 = vweird.f32 %v1614_v12  ;;  %v1025_v7 = vld [vmem:[%s2258_s12 + $0x20] sm:$0xff] }
 0x98b   :  { %vm829_vm8 = vmor %vm827_vm7, %vm828_vm6  ;;  %1041 = vmatpush.msrb.mxu0 %v1025_v7 }
 0x98c   :  { %v823_v14 = vmul.f32 %v1614_v12, %v822_v13  ;;  %v1021_v13 = vld [vmem:[%s2258_s12] sm:$0xff] }
 0x98d   :  { %1042 = vmatpush.msrb.mxu0 %v1024_v8 }
 0x98e   :  { %v824_v15 = vmul.f32 0.5, %v823_v14 }
 0x98f   :  { %1043 = vmatpush.msrb.mxu0 %v1023_v9 }
 0x990   :  { %v825_v16 = vsub.f32 1.5, %v824_v15  ;;  %v1060_v15 = vld [vmem:[%s2259_s20 + $0x38] sm:$0xff] }
 0x991   :  { %1044 = vmatpush.msrb.mxu0 %v1022_v11  ;;  %1072 = vmatpush.msrb.mxu1 %v1060_v15  ;;  %v1218_v15 = vld [vmem:[%s2262_s16 + $0x30] sm:$0xff] }
 0x992   :  { %v826_v17 = vmul.f32 %v1614_v12, %v825_v16  ;;  %v1059_v16 = vld [vmem:[%s2259_s20 + $0x30] sm:$0xff] }
 0x993   :  { %1045 = vmatpush.msrb.mxu0 %v1021_v13  ;;  %1073 = vmatpush.msrb.mxu1 %v1059_v16 }
 0x994   :  { %v830_v19 = vsel %vm829_vm8, %v1614_v12, %v826_v17 }
 0x995   :  { %v831_v20 = vmul.f32 %v830_v19, %v2073_v49  ;;  %v1057_v19 = vld [vmem:[%s2259_s20 + $0x20] sm:$0xff] }
 0x997   :  { %v835_v22 = vmul.f32 %v1593_v18, %v831_v20  ;;  %v1058_v18 = vld [vmem:[%s2259_s20 + $0x28] sm:$0xff]  ;;  %v1056_v20 = vld [vmem:[%s2259_s20 + $0x18] sm:$0xff] }
 0x998   :  { %1074 = vmatpush.msrb.mxu1 %v1058_v18 }
 0x999   :  { %v839_v23 = vadd.f32 %v1594_v21, %v835_v22  ;;  %v1055_v21 = vld [vmem:[%s2259_s20 + $0x10] sm:$0xff] }
 0x99a   :  { %1075 = vmatpush.msrb.mxu1 %v1057_v19  ;;  %v1216_v19 = vld [vmem:[%s2262_s16 + $0x20] sm:$0xff] }
 0x99b   :  { %v840_v24 = vmax.f32 %v839_v23, 0.0 }
 0x99c   :  { %1076 = vmatpush.msrb.mxu1 %v1056_v20  ;;  %v1215_v20 = vld [vmem:[%s2262_s16 + $0x18] sm:$0xff] }
 0x99d   :  { %1526 = vmatmul.msk.f32.vlgmr.msra.gmra.mxu0 %vm215_vm2, %v840_v24 }
 0x99e   :  { %1077 = vmatpush.msrb.mxu1 %v1055_v21  ;;  %1138 = vmatpush.msra.mxu0 %v1091_v38  ;;  %v1214_v21 = vld [vmem:[%s2262_s16 + $0x10] sm:$0xff] }
 0x9a0   :  { %1139 = vmatpush.msra.mxu0 %v1090_v39 }
 0xa1a   :  { %v869_v26 = vpop.f32.mrf.mxu0 }
 0xa1b   :  { %1527 = vmatmul.msk.f32.vlgmr.msra.gmra.mxu1 %vm215_vm2, %v869_v26 }
 0xa98   :  { %v902_v27 = vpop.f32.mrf.mxu1 }
 0xa99   :  { %v905_v28 = vsel %vm215_vm2, %v902_v27, 0.0 }
 0xa9a   :  { %v906_v29 = vrot.slane %v905_v28, 4 }
 0xa9c   :  { %v907_v30 = vadd.f32 %v906_v29, %v905_v28 }
 0xa9e   :  { %v908_v31 = vrot.slane %v907_v30, 2 }
 0xaa0   :  { %v909_v32 = vadd.f32 %v908_v31, %v907_v30 }
 0xaa2   :  { %v910_v33 = vrot.slane %v909_v32, 1 }
 0xaa4   :  { %v911_v34 = vadd.f32 %v910_v33, %v909_v32 }
 0xaa6   :  { %v912_v35 = vmul.f32 %v911_v34, %v1971_v40 }
 0xaa8   :  { %v913_v36 = vsub.f32 %v869_v26, %v912_v35 }
 0xaaa   :  { %v914_v37 = vmul.f32 %v913_v36, %v913_v36 }
 0xaac   :  { %1528 = vmatmul.msk.f32.vlgmr.msra.gmra.mxu2 %vm215_vm2, %v914_v37  ;;  %v1053_v37 = vld [vmem:[%s2259_s20] sm:$0xff] }
 0xb2f   :  { %v935_v41 = vpop.f32.mrf.mxu2 }
 0xb30   :  { %v938_v43 = vsel %vm215_vm2, %v935_v41, 0.0  ;;  %v1089_v41 = vld [vmem:[%s2260_s15 + $0x28] sm:$0xff] }
 0xb31   :  { %v939_v44 = vrot.slane %v938_v43, 4  ;;  %1107 = vmatpush.msrb.mxu2 %v1089_v41  ;;  %1140 = vmatpush.msra.mxu0 %v1089_v41 }
 0xb33   :  { %v940_v47 = vadd.f32 %v939_v44, %v938_v43  ;;  %v1087_v43 = vld [vmem:[%s2260_s15 + $0x18] sm:$0xff]  ;;  %1108 = vmatpush.msrb.mxu2 %v1088_v42  ;;  %1141 = vmatpush.msra.mxu0 %v1088_v42  ;;  %v1086_v44 = vld [vmem:[%s2260_s15 + $0x10] sm:$0xff] }
 0xb35   :  { %v941_v49 = vrot.slane %v940_v47, 2  ;;  %1109 = vmatpush.msrb.mxu2 %v1087_v43  ;;  %1142 = vmatpush.msra.mxu0 %v1087_v43 }
 0xb37   :  { %v942_v51 = vadd.f32 %v941_v49, %v940_v47  ;;  %1110 = vmatpush.msrb.mxu2 %v1086_v44  ;;  %1143 = vmatpush.msra.mxu0 %v1086_v44  ;;  %v1084_v49 = vld [vmem:[%s2260_s15] sm:$0xff] }
 0xb39   :  { %v943_v53 = vrot.slane %v942_v51, 1  ;;  %1111 = vmatpush.msrb.mxu2 %v1085_v45  ;;  %1144 = vmatpush.msra.mxu0 %v1085_v45 }
 0xb3b   :  { %v944_v54 = vadd.f32 %v943_v53, %v942_v51  ;;  %1112 = vmatpush.msrb.mxu2 %v1084_v49  ;;  %1145 = vmatpush.msra.mxu0 %v1084_v49 }
 0xb3d   :  { %v945_v55 = vmul.f32 %v944_v54, %v1971_v40 }
 0xb3f   :  { %v946_v56 = vadd.f32 1e-05, %v945_v55 }
 0xb41   :  { %1615 = vrsqrt.f32 %v946_v56  ;;  %vm953_vm10 = vweird.f32 %v946_v56 }
 0xb47   :  { %v1616_v57 = vpop.eup %1615 }
 0xb48   :  { %v948_v58 = vmul.f32 %v1616_v57, %v946_v56  ;;  %vm954_vm9 = vweird.f32 %v1616_v57 }
 0xb49   :  { %vm955_vm11 = vmor %vm953_vm10, %vm954_vm9 }
 0xb4a   :  { %v949_v59 = vmul.f32 %v1616_v57, %v948_v58 }
 0xb4c   :  { %v950_v60 = vmul.f32 0.5, %v949_v59 }
 0xb4e   :  { %v951_v61 = vsub.f32 1.5, %v950_v60 }
 0xb50   :  { %v952_v62 = vmul.f32 %v1616_v57, %v951_v61 }
 0xb52   :  { %v956_v0 = vsel %vm955_vm11, %v1616_v57, %v952_v62 }
 0xb53   :  { %v957_v1 = vmul.f32 %v956_v0, %v913_v36  ;;  %v1054_v36 = vld [vmem:[%s2259_s20 + $0x8] sm:$0xff] }
 0xb54   :  { %1078 = vmatpush.msrb.mxu1 %v1054_v36 }
 0xb55   :  { %v961_v3 = vmul.f32 %v1595_v63, %v957_v1 }
 0xb56   :  { %1079 = vmatpush.msrb.mxu1 %v1053_v37  ;;  %v1212_v37 = vld [vmem:[%s2262_s16] sm:$0xff] }
 0xb57   :  { %v965_v4 = vadd.f32 %v1596_v2, %v961_v3 }
 0xb59   :  { %v966_v5 = vmax.f32 %v965_v4, 0.0 }
 0xb5b   :  { %1529 = vmatmul.msk.f32.vlgmr.msra.gmra.mxu3 %vm215_vm2, %v966_v5 }
 0xbde   :  { %v995_v10 = vpop.f32.mrf.mxu3 }
 0xbdf   :  { %v998_v12 = vand.u32 2147483647, %v995_v10  ;;  %vm1017_vm3 = vcmp.ge.f32.partialorder %v995_v10, 0.0 }
 0xbe1   :  { %v999_v14 = vsub.f32 0.0, %v998_v12 }
 0xbe3   :  { %v1000_v17 = vmul.f32 1.442695, %v999_v14  ;;  %v1219_v14 = vld [vmem:[%s2262_s16 + $0x38] sm:$0xff] }
 0xbe4   :  { %1233 = vmatpush.msra.mxu1 %v1219_v14  ;;  %1266 = vmatpush.msra.mxu2 %v1219_v14 }
 0xbe5   :  { %1617 = vpow2.f32 %v1000_v17  ;;  %v1217_v17 = vld [vmem:[%s2262_s16 + $0x28] sm:$0xff] }
 0xbe6   :  { %1234 = vmatpush.msra.mxu1 %v1218_v15  ;;  %1267 = vmatpush.msra.mxu2 %v1218_v15 }
 0xbe8   :  { %1235 = vmatpush.msra.mxu1 %v1217_v17  ;;  %1268 = vmatpush.msra.mxu2 %v1217_v17 }
 0xbea   :  { %1236 = vmatpush.msra.mxu1 %v1216_v19  ;;  %1269 = vmatpush.msra.mxu2 %v1216_v19 }
 0xbeb   :  { %v1618_v22 = vpop.eup %1617 }
 0xbec   :  { %v1002_v23 = vadd.f32 1.0, %v1618_v22  ;;  %1237 = vmatpush.msra.mxu1 %v1215_v20  ;;  %1270 = vmatpush.msra.mxu2 %v1215_v20 }
 0xbee   :  { %1619 = vrcp.f32 %v1002_v23  ;;  %v1014_v27 = vand.u32 2147483648, %v1002_v23  ;;  %v1012_v29 = vand.u32 2147483647, %v1002_v23  ;;  %vm1008_vm14 = vweird.f32 %v1002_v23  ;;  %1238 = vmatpush.msra.mxu1 %v1214_v21  ;;  %1271 = vmatpush.msra.mxu2 %v1214_v21 }
 0xbf0   :  { %v1015_v31 = vor.u32 1.1754944e-38, %v1014_v27  ;;  %vm1013_vm1 = vcmp.eq.f32.partialorder %v1012_v29, 8.507059e+37  ;;  %v1597_v29 = vld [vmem:[%s2263_s18] ss:$0 sm:$0xff] }
 0xbf4   :  { %v1620_v24 = vpop.eup %1619 }
 0xbf5   :  { %v1004_v25 = vmul.f32 %v1620_v24, %v1002_v23  ;;  %vm1009_vm13 = vweird.f32 %v1620_v24 }
 0xbf6   :  { %vm1010_vm15 = vmor %vm1008_vm14, %vm1009_vm13 }
 0xbf7   :  { %v1005_v26 = vsub.f32 1.0, %v1004_v25 }
 0xbf9   :  { %v1006_v28 = vmul.f32 %v1620_v24, %v1005_v26 }
 0xbfb   :  { %v1007_v30 = vadd.f32 %v1620_v24, %v1006_v28 }
 0xbfd   :  { %v1011_v32 = vsel %vm1010_vm15, %v1620_v24, %v1007_v30 }
 0xbfe   :  { %v1016_v33 = vsel %vm1013_vm1, %v1015_v31, %v1011_v32  ;;  %v1598_v32 = vld [vmem:[%s2264_s22] ss:$0 sm:$0xff] }
 0xbff   :  { %v1018_v34 = vmul.f32 %v1618_v22, %v1016_v33  ;;  %v1213_v22 = vld [vmem:[%s2262_s16 + $0x8] sm:$0xff] }
 0xc00   :  { %1239 = vmatpush.msra.mxu1 %v1213_v22  ;;  %1272 = vmatpush.msra.mxu2 %v1213_v22 }
 0xc01   :  { %v1019_v35 = vsel %vm1017_vm3, %v1016_v33, %v1018_v34 }
 0xc02   :  { %1020 = vst.msk [vmem:[%s1932_s27] sm:$0xff] %vm180_vm0, %v1019_v35  ;;  %1530 = vmatmul.msk.f32.vlgmr.msrb.gmra.mxu0 %vm180_vm0, %v1019_v35  ;;  %s2261_s27 = sld [smem:[#allocation26_spill]]  ;;  %1240 = vmatpush.msra.mxu1 %v1212_v37 }
 0xc03   :  { %1273 = vmatpush.msra.mxu2 %v1212_v37 }
 0xc08   :  { %v1188_v62 = vld [vmem:[%s2261_s27 + $0x38] sm:$0xff]  ;;  %v1187_v63 = vld [vmem:[%s2261_s27 + $0x30] sm:$0xff]  ;;  %v1186_v2 = vld [vmem:[%s2261_s27 + $0x28] sm:$0xff] }
 0xc09   :  { %1200 = vmatpush.msrb.mxu3 %v1188_v62  ;;  %v1185_v3 = vld [vmem:[%s2261_s27 + $0x20] sm:$0xff]  ;;  %v1184_v5 = vld [vmem:[%s2261_s27 + $0x18] sm:$0xff]  ;;  %v1183_v7 = vld [vmem:[%s2261_s27 + $0x10] sm:$0xff] }
 0xc0a   :  { %v1182_v9 = vld [vmem:[%s2261_s27 + $0x8] sm:$0xff]  ;;  %v1181_v11 = vld [vmem:[%s2261_s27] sm:$0xff] }
 0xc0b   :  { %1201 = vmatpush.msrb.mxu3 %v1187_v63  ;;  %v1310_v62 = vld [vmem:[%s2265_s23 + $0x8] sm:$0xff] }
 0xc0d   :  { %1202 = vmatpush.msrb.mxu3 %v1186_v2 }
 0xc0f   :  { %1203 = vmatpush.msrb.mxu3 %v1185_v3  ;;  %v1341_v3 = vld [vmem:[%s2266_s26 + $0x8] sm:$0xff] }
 0xc11   :  { %1204 = vmatpush.msrb.mxu3 %v1184_v5 }
 0xc13   :  { %1205 = vmatpush.msrb.mxu3 %v1183_v7 }
 0xc15   :  { %1206 = vmatpush.msrb.mxu3 %v1182_v9 }
 0xc17   :  { %1207 = vmatpush.msrb.mxu3 %v1181_v11 }
 0xc19   :  { %1361 = vmatpush.msra.mxu3 %v1341_v3 }
 0xc7f   :  { %v1047_v46 = vpop.f32.mrf.mxu0 }
 0xc80   :  { %vm1050_vm0 = vcmp.ge.f32.partialorder %v1047_v46, 0.0  ;;  %v1051_v47 = vmul.f32 0.2, %v1047_v46 }
 0xc82   :  { %v1052_v48 = vsel %vm1050_vm0, %v1047_v46, %v1051_v47 }
 0xc83   :  { %1531 = vmatmul.msk.f32.vlgmr.msrb.gmra.mxu1 %vm215_vm2, %v1052_v48 }
 0xc84   :  { %1394 = vmatpush.msrb.mxu1 %v1341_v3 }
 0xd00   :  { %v1081_v50 = vpop.f32.mrf.mxu1 }
 0xd01   :  { %1532 = vmatmul.msk.f32.vlgmr.msrb.gmra.mxu2 %vm215_vm2, %v1081_v50 }
 0xd84   :  { %v1114_v51 = vpop.f32.mrf.mxu2 }
 0xd85   :  { %v1117_v52 = vsel %vm215_vm2, %v1114_v51, 0.0  ;;  %v1316_v51 = vld [vmem:[%s2265_s23 + $0x38] sm:$0xff] }
 0xd86   :  { %v1118_v53 = vrot.slane %v1117_v52, 4  ;;  %1328 = vmatpush.msrb.mxu0 %v1316_v51 }
 0xd88   :  { %v1119_v54 = vadd.f32 %v1118_v53, %v1117_v52  ;;  %v1315_v52 = vld [vmem:[%s2265_s23 + $0x30] sm:$0xff] }
 0xd89   :  { %1329 = vmatpush.msrb.mxu0 %v1315_v52 }
 0xd8a   :  { %v1120_v55 = vrot.slane %v1119_v54, 2 }
 0xd8c   :  { %v1121_v56 = vadd.f32 %v1120_v55, %v1119_v54  ;;  %v1314_v55 = vld [vmem:[%s2265_s23 + $0x28] sm:$0xff] }
 0xd8d   :  { %1330 = vmatpush.msrb.mxu0 %v1314_v55 }
 0xd8e   :  { %v1122_v57 = vrot.slane %v1121_v56, 1 }
 0xd90   :  { %v1123_v58 = vadd.f32 %v1122_v57, %v1121_v56  ;;  %v1313_v56 = vld [vmem:[%s2265_s23 + $0x20] sm:$0xff] }
 0xd91   :  { %1331 = vmatpush.msrb.mxu0 %v1313_v56 }
 0xd92   :  { %v1124_v59 = vmul.f32 %v1123_v58, %v1971_v40  ;;  %v1312_v58 = vld [vmem:[%s2265_s23 + $0x18] sm:$0xff] }
 0xd93   :  { %1332 = vmatpush.msrb.mxu0 %v1312_v58 }
 0xd94   :  { %v2146_v60 = vsub.f32 %v1081_v50, %v1124_v59 }
 0xd96   :  { %v1126_v61 = vmul.f32 %v2146_v60, %v2146_v60 }
 0xd98   :  { %1533 = vmatmul.msk.f32.vlgmr.msra.gmra.mxu0 %vm215_vm2, %v1126_v61 }
 0xe15   :  { %v1147_v0 = vpop.f32.mrf.mxu0 }
 0xe16   :  { %v1150_v1 = vsel %vm215_vm2, %v1147_v0, 0.0  ;;  %v1309_v0 = vld [vmem:[%s2265_s23] sm:$0xff] }
 0xe17   :  { %v1151_v4 = vrot.slane %v1150_v1, 4 }
 0xe19   :  { %v1152_v6 = vadd.f32 %v1151_v4, %v1150_v1  ;;  %v1340_v4 = vld [vmem:[%s2266_s26] sm:$0xff] }
 0xe1a   :  { %1362 = vmatpush.msra.mxu3 %v1340_v4  ;;  %1395 = vmatpush.msrb.mxu1 %v1340_v4 }
 0xe1b   :  { %v1153_v8 = vrot.slane %v1152_v6, 2 }
 0xe1d   :  { %v1154_v10 = vadd.f32 %v1153_v8, %v1152_v6 }
 0xe1f   :  { %v1155_v12 = vrot.slane %v1154_v10, 1 }
 0xe21   :  { %v1156_v13 = vadd.f32 %v1155_v12, %v1154_v10 }
 0xe23   :  { %v1157_v16 = vmul.f32 %v1156_v13, %v1971_v40  ;;  %v1599_v13 = vld [vmem:[%s2267_s28] ss:$0 sm:$0xff] }
 0xe25   :  { %v1158_v18 = vadd.f32 1e-05, %v1157_v16  ;;  %v1600_v16 = vld [vmem:[%s2268_s1] ss:$0 sm:$0xff] }
 0xe27   :  { %1621 = vrsqrt.f32 %v1158_v18  ;;  %vm1165_vm5 = vweird.f32 %v1158_v18 }
 0xe2d   :  { %v1622_v23 = vpop.eup %1621 }
 0xe2e   :  { %v1160_v24 = vmul.f32 %v1622_v23, %v1158_v18  ;;  %vm1166_vm4 = vweird.f32 %v1622_v23 }
 0xe2f   :  { %vm1167_vm6 = vmor %vm1165_vm5, %vm1166_vm4 }
 0xe30   :  { %v1161_v25 = vmul.f32 %v1622_v23, %v1160_v24 }
 0xe32   :  { %v1162_v26 = vmul.f32 0.5, %v1161_v25 }
 0xe34   :  { %v1163_v27 = vsub.f32 1.5, %v1162_v26 }
 0xe36   :  { %v1164_v28 = vmul.f32 %v1622_v23, %v1163_v27 }
 0xe38   :  { %v1168_v30 = vsel %vm1167_vm6, %v1622_v23, %v1164_v28 }
 0xe39   :  { %v1169_v31 = vmul.f32 %v1168_v30, %v2146_v60  ;;  %v1311_v60 = vld [vmem:[%s2265_s23 + $0x10] sm:$0xff] }
 0xe3a   :  { %1333 = vmatpush.msrb.mxu0 %v1311_v60 }
 0xe3b   :  { %v1173_v33 = vmul.f32 %v1597_v29, %v1169_v31 }
 0xe3c   :  { %1334 = vmatpush.msrb.mxu0 %v1310_v62 }
 0xe3d   :  { %v1177_v34 = vadd.f32 %v1598_v32, %v1173_v33 }
 0xe3e   :  { %1335 = vmatpush.msrb.mxu0 %v1309_v0 }
 0xe3f   :  { %vm1178_vm7 = vcmp.ge.f32.partialorder %v1177_v34, 0.0  ;;  %v1179_v35 = vmul.f32 0.2, %v1177_v34 }
 0xe41   :  { %v1180_v36 = vsel %vm1178_vm7, %v1177_v34, %v1179_v35 }
 0xe42   :  { %1534 = vmatmul.msk.f32.vlgmr.msrb.gmra.mxu3 %vm215_vm2, %v1180_v36 }
 0xec5   :  { %v1209_v38 = vpop.f32.mrf.mxu3 }
 0xec6   :  { %1535 = vmatmul.msk.f32.vlgmr.msra.gmra.mxu1 %vm215_vm2, %v1209_v38 }
 0xf43   :  { %v1242_v39 = vpop.f32.mrf.mxu1 }
 0xf44   :  { %v1245_v41 = vsel %vm215_vm2, %v1242_v39, 0.0 }
 0xf45   :  { %v1246_v42 = vrot.slane %v1245_v41, 4 }
 0xf47   :  { %v1247_v43 = vadd.f32 %v1246_v42, %v1245_v41 }
 0xf49   :  { %v1248_v44 = vrot.slane %v1247_v43, 2 }
 0xf4b   :  { %v1249_v45 = vadd.f32 %v1248_v44, %v1247_v43 }
 0xf4d   :  { %v1250_v46 = vrot.slane %v1249_v45, 1 }
 0xf4f   :  { %v1251_v47 = vadd.f32 %v1250_v46, %v1249_v45 }
 0xf51   :  { %v1252_v48 = vmul.f32 %v1251_v47, %v1971_v40 }
 0xf53   :  { %v1253_v49 = vsub.f32 %v1209_v38, %v1252_v48 }
 0xf55   :  { %v1254_v50 = vmul.f32 %v1253_v49, %v1253_v49 }
 0xf57   :  { %1536 = vmatmul.msk.f32.vlgmr.msra.gmra.mxu2 %vm215_vm2, %v1254_v50 }
 0xfda   :  { %v1275_v53 = vpop.f32.mrf.mxu2 }
 0xfdb   :  { %v1278_v54 = vsel %vm215_vm2, %v1275_v53, 0.0 }
 0xfdc   :  { %v1279_v57 = vrot.slane %v1278_v54, 4 }
 0xfde   :  { %v1280_v59 = vadd.f32 %v1279_v57, %v1278_v54 }
 0xfe0   :  { %v1281_v61 = vrot.slane %v1280_v59, 2 }
 0xfe2   :  { %v1282_v63 = vadd.f32 %v1281_v61, %v1280_v59 }
 0xfe4   :  { %v1283_v1 = vrot.slane %v1282_v63, 1 }
 0xfe6   :  { %v1284_v2 = vadd.f32 %v1283_v1, %v1282_v63 }
 0xfe8   :  { %v1285_v5 = vmul.f32 %v1284_v2, %v1971_v40 }
 0xfea   :  { %v1286_v6 = vadd.f32 1e-05, %v1285_v5 }
 0xfec   :  { %1623 = vrsqrt.f32 %v1286_v6  ;;  %vm1293_vm9 = vweird.f32 %v1286_v6 }
 0xff2   :  { %v1624_v7 = vpop.eup %1623 }
 0xff3   :  { %v1288_v8 = vmul.f32 %v1624_v7, %v1286_v6  ;;  %vm1294_vm8 = vweird.f32 %v1624_v7 }
 0xff4   :  { %vm1295_vm10 = vmor %vm1293_vm9, %vm1294_vm8 }
 0xff5   :  { %v1289_v9 = vmul.f32 %v1624_v7, %v1288_v8 }
 0xff7   :  { %v1290_v10 = vmul.f32 0.5, %v1289_v9 }
 0xff9   :  { %v1291_v11 = vsub.f32 1.5, %v1290_v10 }
 0xffb   :  { %v1292_v12 = vmul.f32 %v1624_v7, %v1291_v11 }
 0xffd   :  { %v1296_v14 = vsel %vm1295_vm10, %v1624_v7, %v1292_v12 }
 0xffe   :  { %v1297_v15 = vmul.f32 %v1296_v14, %v1253_v49 }
0x1000   :  { %v1301_v17 = vmul.f32 %v1599_v13, %v1297_v15 }
0x1002   :  { %v1305_v18 = vadd.f32 %v1600_v16, %v1301_v17 }
0x1004   :  { %vm1306_vm11 = vcmp.ge.f32.partialorder %v1305_v18, 0.0  ;;  %v1307_v19 = vmul.f32 0.2, %v1305_v18 }
0x1006   :  { %v1308_v20 = vsel %vm1306_vm11, %v1305_v18, %v1307_v19 }
0x1007   :  { %1537 = vmatmul.msk.f32.vlgmr.msrb.gmra.mxu0 %vm215_vm2, %v1308_v20 }
0x1084   :  { %v1337_v21 = vpop.f32.mrf.mxu0 }
0x1085   :  { %1538 = vmatmul.msk.f32.vlgmr.msra.gmra.mxu3 %vm506_vm12, %v1337_v21 }
0x1108   :  { %v1364_v22 = vpop.f32.mrf.mxu3 }
0x1109   :  { %v1367_v23 = vsel %vm506_vm12, %v1364_v22, 0.0 }
0x110a   :  { %v1368_v24 = vrot.slane %v1367_v23, 4 }
0x110c   :  { %v1369_v25 = vadd.f32 %v1368_v24, %v1367_v23 }
0x110e   :  { %v1370_v26 = vrot.slane %v1369_v25, 2 }
0x1110   :  { %v1371_v27 = vadd.f32 %v1370_v26, %v1369_v25 }
0x1112   :  { %v1372_v28 = vrot.slane %v1371_v27, 1 }
0x1114   :  { %v1373_v29 = vadd.f32 %v1372_v28, %v1371_v27 }
0x1116   :  { %v1374_v30 = vmul.f32 %v1373_v29, %v1971_v40 }
0x1118   :  { %v1375_v31 = vsub.f32 %v1337_v21, %v1374_v30 }
0x111a   :  { %v1376_v32 = vmul.f32 %v1375_v31, %v1375_v31 }
0x111c   :  { %1539 = vmatmul.msk.f32.vlgmr.msrb.gmra.mxu1 %vm506_vm12, %v1376_v32 }
0x111d   :  { %1650 = shalt.err (!%p1647_p4)
}
0x111e   :  { %1444 = dma.vmem_to_hbm [thread:$0]  %s1440_s10, 128, %s1442_s2, [#allocation3]   ;;  %v1602_v53 = vld [vmem:[%s1927_s30] ss:$0 sm:$0xff] }
0x111f   :  { %s2269_s9 = sld [smem:[#allocation32_spill]]  ;;  %s1723_s4 = smov [#allocation4]  }
0x1120   :  { %s1450_s13 = sshll.u32 %s1723_s4, 4  ;;  %s1452_s17 = sshll.u32 %s1942_s6, 4  ;;  %s1451_s13 = int_to_ptr.vmem [resolvable:$true] %s1450_s13  ;;  %s1453_s17 = int_to_ptr.hbm [resolvable:$true] %s1452_s17 }
0x1121   :  { %s1663_s21 = sshra.s32 %s1453_s17, 4  ;;  %s1667_s29 = scalar_lea.hbm %s1942_s6, 8  ;;  %s1664_s21 = int_to_ptr.hbm [resolvable:$true] %s1663_s21 }
0x1122   :  { %s1665_s25 = scalar_lea.hbm %s1664_s21, 8  ;;  %p1668_p6 = scmp.lt.s32.totalorder %s1664_s21, %s1942_s6 }
0x1123   :  { %p1666_p5 = scmp.ne.s32.totalorder %s1664_s21, %s1665_s25  ;;  %p1669_p7 = scmp.lt.s32.totalorder %s1667_s29, %s1665_s25 }
0x1125   :  { %v1601_v50 = vld [vmem:[%s2269_s9] ss:$0 sm:$0xff]  ;;  %p1670_p8 = por %p1669_p7, %p1668_p6 }
0x1127   :  { %p1671_p9 = pnand %p1670_p8, %p1666_p5 }
0x1199   :  { %v1397_v33 = vpop.f32.mrf.mxu1 }
0x119a   :  { %v1400_v34 = vsel %vm506_vm12, %v1397_v33, 0.0 }
0x119b   :  { %v1401_v35 = vrot.slane %v1400_v34, 4 }
0x119d   :  { %v1402_v36 = vadd.f32 %v1401_v35, %v1400_v34 }
0x119f   :  { %v1403_v37 = vrot.slane %v1402_v36, 2 }
0x11a1   :  { %v1404_v38 = vadd.f32 %v1403_v37, %v1402_v36 }
0x11a3   :  { %v1405_v39 = vrot.slane %v1404_v38, 1 }
0x11a5   :  { %v1406_v41 = vadd.f32 %v1405_v39, %v1404_v38 }
0x11a7   :  { %v1407_v42 = vmul.f32 %v1406_v41, %v1971_v40 }
0x11a9   :  { %v1408_v43 = vadd.f32 1e-05, %v1407_v42 }
0x11ab   :  { %1625 = vrsqrt.f32 %v1408_v43  ;;  %vm1415_vm13 = vweird.f32 %v1408_v43 }
0x11b1   :  { %v1626_v44 = vpop.eup %1625 }
0x11b2   :  { %v1410_v45 = vmul.f32 %v1626_v44, %v1408_v43  ;;  %vm1416_vm2 = vweird.f32 %v1626_v44 }
0x11b3   :  { %vm1417_vm14 = vmor %vm1415_vm13, %vm1416_vm2 }
0x11b4   :  { %v1411_v46 = vmul.f32 %v1626_v44, %v1410_v45 }
0x11b6   :  { %v1412_v47 = vmul.f32 0.5, %v1411_v46 }
0x11b8   :  { %v1413_v48 = vsub.f32 1.5, %v1412_v47 }
0x11ba   :  { %v1414_v49 = vmul.f32 %v1626_v44, %v1413_v48 }
0x11bc   :  { %v1418_v51 = vsel %vm1417_vm14, %v1626_v44, %v1414_v49 }
0x11bd   :  { %v1419_v52 = vmul.f32 %v1418_v51, %v1375_v31 }
0x11bf   :  { %v1423_v54 = vmul.f32 %v1601_v50, %v1419_v52 }
0x11c1   :  { %v1427_v40 = vadd.f32 %v1602_v53, %v1423_v54 }
0x11c3   :  { %vm1428_vm15 = vcmp.ge.f32.partialorder %v1427_v40, 0.0  ;;  %v1429_v55 = vmul.f32 0.2, %v1427_v40 }
0x11c5   :  { %v1430_v56 = vsel %vm1428_vm15, %v1427_v40, %v1429_v55 }
0x11c6   :  { %1431 = vst.msk [vmem:[#allocation4] sm:$0xff] %vm506_vm12, %v1430_v56 }
0x11c7   :  { %1674 = shalt.err (!%p1671_p9)
}
0x11c8   :  { %1455 = dma.vmem_to_hbm [thread:$0]  %s1451_s13, 128, %s1453_s17, [#allocation5]  }
0x11c9   :  { %1675 = dma.done.wait [#allocation3], 128  }
0x11ca   :  { %1676 = vsyncadd [#allocation3], 4294967168 }
0x11cb   :  { %1677 = dma.done.wait [#allocation5], 128  }
0x11cc   :  { %1678 = vsyncadd [#allocation5], 4294967168 }
0x11cd   :  { %1466 = vsyncpa [#allocation3], 1 }
0x11ce   :  { %1467 = vsyncpa [#allocation5], 1 }

</bundles_post_ra>
